<compile_context>
chip_gen: v7x
topology: tpu7x:2x2x1
jax: 0.10.0
libtpu: 0.0.40
codegen_flags: <defaults>
</compile_context>

<pallas_src>
import functools

import jax
import jax.numpy as jnp
from jax.experimental import pallas as pl
from jax.experimental.pallas import tpu as pltpu


def _round_up(x, m):
    return (x + m - 1) // m * m


# ----------------------------------------------------------------------------
# Pallas kernel: fused LKxLK conv (single im2col matmul) + bias + PReLU,
# one batch element per grid step.
# ----------------------------------------------------------------------------
def lkconv_kernel(x_ref, w_ref, b_ref, a_ref, o_ref, buf_ref, patch_ref,
                  *, H, W, LK, D):
    # x_ref    : (1, Cin, H*W)       flat NCHW input (lane-dense on H*W)
    # w_ref    : (Cout, LK*LK*Cin)   folded weights, columns ordered (kh,kw,ci)
    # b_ref    : (Cout, 1)           folded bias
    # a_ref    : (1,) in SMEM        PReLU slope (single-parameter nn.PReLU)
    # o_ref    : (1, Cout, H*W)
    # buf_ref  : (Cin, LBUF) VMEM    zero-guarded staging buffer; image data
    #                                lives at lane offset D (128-aligned)
    # patch_ref: (LK*LK*Cin, H*W)    im2col patch matrix scratch
    P = LK // 2
    C = x_ref.shape[1]
    HW = H * W

    # Stage the image into the guarded buffer.  The >= P*W + P zero lanes on
    # each side of the data implement the vertical 'same' padding for free.
    buf_ref[...] = jnp.zeros_like(buf_ref)
    buf_ref[:, D:D + HW] = x_ref[0]
    xpad = buf_ref[...]                                    # (C, LBUF)

    # Output-column index of every lane (period W); used to zero taps that
    # would otherwise wrap horizontally across rows of the flattened image.
    lane = jax.lax.broadcasted_iota(jnp.int32, (1, HW), 1)
    if (W & (W - 1)) == 0:                                 # power-of-two width
        col = jnp.bitwise_and(lane, W - 1)
    else:
        col = lane % W

    # im2col: LK*LK shifted (C, H*W) slabs written into one patch matrix.
    # Every shift is a static lane-offset slice of the staged buffer.
    for kh in range(LK):
        for kw in range(LK):
            dw = kw - P
            s = D + (kh - P) * W + dw                      # static, >= 0
            slab = xpad[:, s:s + HW]                       # (C, H*W)
            if dw != 0:
                valid = jnp.logical_and(col + dw >= 0, col + dw < W)
                slab = jnp.where(valid, slab, 0.0)
            r = (kh * LK + kw) * C
            patch_ref[r:r + C, :] = slab

    # Single fused MXU matmul: (Cout, K) x (K, H*W), K = LK*LK*Cin.
    acc = jnp.dot(w_ref[...], patch_ref[...],
                  preferred_element_type=jnp.float32)      # (Cout, H*W) f32
    acc = acc + b_ref[...]                                 # (Cout, 1) bcast

    alpha = a_ref[0]                                       # SMEM scalar
    y = jnp.where(acc >= 0, acc, alpha * acc)              # PReLU
    o_ref[0] = y.astype(o_ref.dtype)


# ----------------------------------------------------------------------------
# Parameter folding (plain JAX glue).
# ----------------------------------------------------------------------------
def combine_params(w_reg, b_reg, w_one, b_one, w_lk, b_lk, lk):
    """Fold 3x3 + 1x1 + LKxLK convs + identity skip into one (Cout, LK*LK*Cin)
    matrix whose columns are ordered (kh, kw, ci) to match the kernel's im2col
    patch rows, plus the combined bias as a (Cout, 1) column."""
    cout, cin = w_lk.shape[0], w_lk.shape[1]
    assert cin == cout, "residual '+ x' requires in_channels == out_channels"
    c = lk // 2
    w = w_lk                                               # OIHW (Co,Ci,LK,LK)
    w = w.at[:, :, c - 1:c + 2, c - 1:c + 2].add(w_reg)    # 3x3 at the center
    w = w.at[:, :, c, c].add(w_one[:, :, 0, 0])            # 1x1 at the center
    w = w.at[:, :, c, c].add(jnp.eye(cout, cin, dtype=w.dtype))   # "+ x"
    w2d = jnp.transpose(w, (0, 2, 3, 1)).reshape(cout, lk * lk * cin)
    b2d = (b_reg + b_one + b_lk).reshape(cout, 1)
    return w2d, b2d


# ----------------------------------------------------------------------------
# Wrapper: pallas_call with lane-dense blocks, no transposes, no HBM pad.
# ----------------------------------------------------------------------------
@functools.partial(jax.jit, static_argnames=("lk",))
def lkconv_blk_forward(x_nchw, w_reg, b_reg, w_one, b_one, w_lk, b_lk,
                       prelu_alpha, lk):
    w2d, b2d = combine_params(w_reg, b_reg, w_one, b_one, w_lk, b_lk, lk)

    B, C, H, W = x_nchw.shape
    HW = H * W
    P = lk // 2
    guard = P * W + P                      # flat halo needed on each side
    D = _round_up(guard, 128)              # 128-aligned data offset in scratch
    LBUF = _round_up(D + HW + guard, 128)  # staged-buffer lane length

    x_flat = x_nchw.reshape(B, C, HW)      # free: no transpose, no pad
    alpha = prelu_alpha.reshape(1).astype(jnp.float32)

    kernel = functools.partial(lkconv_kernel, H=H, W=W, LK=lk, D=D)

    out_flat = pl.pallas_call(
        kernel,
        out_shape=jax.ShapeDtypeStruct((B, C, HW), x_nchw.dtype),
        grid_spec=pltpu.PrefetchScalarGridSpec(
            num_scalar_prefetch=0,
            grid=(B,),
            in_specs=[
                pl.BlockSpec((1, C, HW), lambda b: (b, 0, 0)),
                pl.BlockSpec((C, lk * lk * C), lambda b: (0, 0)),
                pl.BlockSpec((C, 1), lambda b: (0, 0)),
                pl.BlockSpec(memory_space=pltpu.MemorySpace.SMEM),
            ],
            out_specs=pl.BlockSpec((1, C, HW), lambda b: (b, 0, 0)),
            scratch_shapes=[
                pltpu.VMEM((C, LBUF), x_nchw.dtype),
                pltpu.VMEM((lk * lk * C, HW), x_nchw.dtype),
            ],
        ),
        compiler_params=pltpu.CompilerParams(
            dimension_semantics=("parallel",)),
    )(x_flat, w2d, b2d, alpha)

    return out_flat.reshape(B, C, H, W)    # free reshape back to NCHW


# ----------------------------------------------------------------------------
# Independent pure-JAX reference: three separate convs + skip + PReLU.
# ----------------------------------------------------------------------------
def reference_forward(x_nchw, w_reg, b_reg, w_one, b_one, w_lk, b_lk,
                      prelu_alpha, lk):
    def conv(x, w, b, k):
        p = k // 2
        y = jax.lax.conv_general_dilated(
            x, w, window_strides=(1, 1), padding=[(p, p), (p, p)],
            dimension_numbers=("NCHW", "OIHW", "NCHW"),
            precision=jax.lax.Precision.HIGHEST)
        return y + b.reshape(1, -1, 1, 1)

    y = (conv(x_nchw, w_reg, b_reg, 3) + conv(x_nchw, w_one, b_one, 1)
         + conv(x_nchw, w_lk, b_lk, lk) + x_nchw)
    a = prelu_alpha.reshape(())
    return jnp.where(y >= 0, y, a * y)


if __name__ == "__main__":
    # Small synthetic config: dim=2, large_kernel=5, in_ch=out_ch=4.
    B, C, H, W = 2, 4, 16, 16
    LK = 5

    key = jax.random.PRNGKey(0)
    ks = jax.random.split(key, 8)
    x = jax.random.normal(ks[0], (B, C, H, W), jnp.float32)

    # Deterministic parameter init (PyTorch OIHW weight layout).
    w_reg = jax.random.normal(ks[1], (C, C, 3, 3), jnp.float32) * 0.1
    b_reg = jax.random.normal(ks[2], (C,), jnp.float32) * 0.1
    w_one = jax.random.normal(ks[3], (C, C, 1, 1), jnp.float32) * 0.1
    b_one = jax.random.normal(ks[4], (C,), jnp.float32) * 0.1
    w_lk = jax.random.normal(ks[5], (C, C, LK, LK), jnp.float32) * 0.1
    b_lk = jax.random.normal(ks[6], (C,), jnp.float32) * 0.1
    prelu_alpha = jnp.array([0.25], jnp.float32)   # nn.PReLU() default

    out = lkconv_blk_forward(x, w_reg, b_reg, w_one, b_one, w_lk, b_lk,
                             prelu_alpha, lk=LK)
    out = jax.block_until_ready(out)

    ref = reference_forward(x, w_reg, b_reg, w_one, b_one, w_lk, b_lk,
                            prelu_alpha, LK)
    assert out.shape == (B, C, H, W)
    assert jnp.allclose(out, ref, atol=1e-3, rtol=1e-3), "mismatch vs reference"

    print("KERNEL_OK")
</pallas_src>

<mosaic_0001>
module attributes {stable_mosaic.version = 11 : i64} {
  func.func @lkconv_kernel(%arg0: i32, %arg1: memref<1x4x256xf32, #tpu.memory_space<vmem>>, %arg2: memref<4x100xf32, #tpu.memory_space<vmem>>, %arg3: memref<4x1xf32, #tpu.memory_space<vmem>>, %arg4: memref<1xf32, #tpu.memory_space<smem>>, %arg5: memref<1x4x256xf32, #tpu.memory_space<vmem>>, %arg6: memref<4x512xf32, #tpu.memory_space<vmem>>, %arg7: memref<100x256xf32, #tpu.memory_space<vmem>>) attributes {dimension_semantics = [#tpu.dimension_semantics<parallel>], iteration_bounds = array<i64: 2>, scalar_prefetch = 0 : i64, scratch_operands = 2 : i64, tpu.core_type = #tpu.core_type<tc>, window_params = [{transform_indices = @transform_0, window_bounds = array<i64: 1, 4, 256>}, {pipeline_mode = #tpu.pipeline_mode<synchronous>, transform_indices = @transform_1, window_bounds = array<i64: 4, 100>}, {pipeline_mode = #tpu.pipeline_mode<synchronous>, transform_indices = @transform_2, window_bounds = array<i64: 4, 1>}, {transform_indices = @transform_3, window_bounds = array<i64: 1>}, {transform_indices = @transform_4, window_bounds = array<i64: 1, 4, 256>}]} {
    %cst = arith.constant 0.000000e+00 : f32
    %0 = vector.broadcast %cst : f32 to vector<4x512xf32>
    %c0 = arith.constant 0 : index
    %c0_0 = arith.constant 0 : index
    %1 = vector.load %arg6[%c0, %c0_0] : memref<4x512xf32, #tpu.memory_space<vmem>>, vector<4x512xf32>
    tpu.vector_store %arg6[%c0, %c0_0], %0 {strides = array<i32>} : memref<4x512xf32, #tpu.memory_space<vmem>>, vector<4x512xf32>,
    %c0_1 = arith.constant 0 : index
    %c0_2 = arith.constant 0 : index
    %c0_3 = arith.constant 0 : index
    %2 = vector.load %arg1[%c0_1, %c0_2, %c0_3] : memref<1x4x256xf32, #tpu.memory_space<vmem>>, vector<1x4x256xf32>
    %3 = vector.shape_cast %2 : vector<1x4x256xf32> to vector<4x256xf32>
    %c0_4 = arith.constant 0 : index
    %c128 = arith.constant 128 : index
    %4 = vector.load %arg6[%c0_4, %c128] : memref<4x512xf32, #tpu.memory_space<vmem>>, vector<4x256xf32>
    tpu.vector_store %arg6[%c0_4, %c128], %3 {strides = array<i32>} : memref<4x512xf32, #tpu.memory_space<vmem>>, vector<4x256xf32>,
    %c0_5 = arith.constant 0 : index
    %c0_6 = arith.constant 0 : index
    %5 = vector.load %arg6[%c0_5, %c0_6] : memref<4x512xf32, #tpu.memory_space<vmem>>, vector<4x512xf32>
    %6 = tpu.iota {dimensions = array<i32: 1>} : vector<1x256xi32>
    %c15_i32 = arith.constant 15 : i32
    %7 = vector.broadcast %c15_i32 : i32 to vector<1x256xi32>
    %8 = arith.andi %6, %7 : vector<1x256xi32>
    %9 = vector.extract_strided_slice %5 {offsets = [0, 94], sizes = [4, 256], strides = [1, 1]} : vector<4x512xf32> to vector<4x256xf32>
    %c-2_i32 = arith.constant -2 : i32
    %10 = vector.broadcast %c-2_i32 : i32 to vector<1x256xi32>
    %11 = arith.addi %8, %10 : vector<1x256xi32>
    %c0_i32 = arith.constant 0 : i32
    %12 = vector.broadcast %c0_i32 : i32 to vector<1x256xi32>
    %13 = arith.cmpi sge, %11, %12 : vector<1x256xi32>
    %c-2_i32_7 = arith.constant -2 : i32
    %14 = vector.broadcast %c-2_i32_7 : i32 to vector<1x256xi32>
    %15 = arith.addi %8, %14 : vector<1x256xi32>
    %c16_i32 = arith.constant 16 : i32
    %16 = vector.broadcast %c16_i32 : i32 to vector<1x256xi32>
    %17 = arith.cmpi slt, %15, %16 : vector<1x256xi32>
    %18 = arith.andi %13, %17 : vector<1x256xi1>
    %cst_8 = arith.constant 0.000000e+00 : f32
    %19 = vector.shape_cast %18 : vector<1x256xi1> to vector<1x256xi1>
    %20 = vector.broadcast %19 : vector<1x256xi1> to vector<4x256xi1>
    %21 = vector.broadcast %cst_8 : f32 to vector<4x256xf32>
    %22 = arith.select %20, %9, %21 : vector<4x256xi1>, vector<4x256xf32>
    %c0_9 = arith.constant 0 : index
    %c0_10 = arith.constant 0 : index
    %23 = vector.load %arg7[%c0_9, %c0_10] : memref<100x256xf32, #tpu.memory_space<vmem>>, vector<4x256xf32>
    tpu.vector_store %arg7[%c0_9, %c0_10], %22 {strides = array<i32>} : memref<100x256xf32, #tpu.memory_space<vmem>>, vector<4x256xf32>,
    %24 = vector.extract_strided_slice %5 {offsets = [0, 95], sizes = [4, 256], strides = [1, 1]} : vector<4x512xf32> to vector<4x256xf32>
    %c-1_i32 = arith.constant -1 : i32
    %25 = vector.broadcast %c-1_i32 : i32 to vector<1x256xi32>
    %26 = arith.addi %8, %25 : vector<1x256xi32>
    %c0_i32_11 = arith.constant 0 : i32
    %27 = vector.broadcast %c0_i32_11 : i32 to vector<1x256xi32>
    %28 = arith.cmpi sge, %26, %27 : vector<1x256xi32>
    %c-1_i32_12 = arith.constant -1 : i32
    %29 = vector.broadcast %c-1_i32_12 : i32 to vector<1x256xi32>
    %30 = arith.addi %8, %29 : vector<1x256xi32>
    %c16_i32_13 = arith.constant 16 : i32
    %31 = vector.broadcast %c16_i32_13 : i32 to vector<1x256xi32>
    %32 = arith.cmpi slt, %30, %31 : vector<1x256xi32>
    %33 = arith.andi %28, %32 : vector<1x256xi1>
    %cst_14 = arith.constant 0.000000e+00 : f32
    %34 = vector.shape_cast %33 : vector<1x256xi1> to vector<1x256xi1>
    %35 = vector.broadcast %34 : vector<1x256xi1> to vector<4x256xi1>
    %36 = vector.broadcast %cst_14 : f32 to vector<4x256xf32>
    %37 = arith.select %35, %24, %36 : vector<4x256xi1>, vector<4x256xf32>
    %c4 = arith.constant 4 : index
    %c0_15 = arith.constant 0 : index
    %38 = vector.load %arg7[%c4, %c0_15] : memref<100x256xf32, #tpu.memory_space<vmem>>, vector<4x256xf32>
    tpu.vector_store %arg7[%c4, %c0_15], %37 {strides = array<i32>} : memref<100x256xf32, #tpu.memory_space<vmem>>, vector<4x256xf32>,
    %39 = vector.extract_strided_slice %5 {offsets = [0, 96], sizes = [4, 256], strides = [1, 1]} : vector<4x512xf32> to vector<4x256xf32>
    %c8 = arith.constant 8 : index
    %c0_16 = arith.constant 0 : index
    %40 = vector.load %arg7[%c8, %c0_16] : memref<100x256xf32, #tpu.memory_space<vmem>>, vector<4x256xf32>
    tpu.vector_store %arg7[%c8, %c0_16], %39 {strides = array<i32>} : memref<100x256xf32, #tpu.memory_space<vmem>>, vector<4x256xf32>,
    %41 = vector.extract_strided_slice %5 {offsets = [0, 97], sizes = [4, 256], strides = [1, 1]} : vector<4x512xf32> to vector<4x256xf32>
    %c1_i32 = arith.constant 1 : i32
    %42 = vector.broadcast %c1_i32 : i32 to vector<1x256xi32>
    %43 = arith.addi %8, %42 : vector<1x256xi32>
    %c0_i32_17 = arith.constant 0 : i32
    %44 = vector.broadcast %c0_i32_17 : i32 to vector<1x256xi32>
    %45 = arith.cmpi sge, %43, %44 : vector<1x256xi32>
    %c1_i32_18 = arith.constant 1 : i32
    %46 = vector.broadcast %c1_i32_18 : i32 to vector<1x256xi32>
    %47 = arith.addi %8, %46 : vector<1x256xi32>
    %c16_i32_19 = arith.constant 16 : i32
    %48 = vector.broadcast %c16_i32_19 : i32 to vector<1x256xi32>
    %49 = arith.cmpi slt, %47, %48 : vector<1x256xi32>
    %50 = arith.andi %45, %49 : vector<1x256xi1>
    %cst_20 = arith.constant 0.000000e+00 : f32
    %51 = vector.shape_cast %50 : vector<1x256xi1> to vector<1x256xi1>
    %52 = vector.broadcast %51 : vector<1x256xi1> to vector<4x256xi1>
    %53 = vector.broadcast %cst_20 : f32 to vector<4x256xf32>
    %54 = arith.select %52, %41, %53 : vector<4x256xi1>, vector<4x256xf32>
    %c12 = arith.constant 12 : index
    %c0_21 = arith.constant 0 : index
    %55 = vector.load %arg7[%c12, %c0_21] : memref<100x256xf32, #tpu.memory_space<vmem>>, vector<4x256xf32>
    tpu.vector_store %arg7[%c12, %c0_21], %54 {strides = array<i32>} : memref<100x256xf32, #tpu.memory_space<vmem>>, vector<4x256xf32>,
    %56 = vector.extract_strided_slice %5 {offsets = [0, 98], sizes = [4, 256], strides = [1, 1]} : vector<4x512xf32> to vector<4x256xf32>
    %c2_i32 = arith.constant 2 : i32
    %57 = vector.broadcast %c2_i32 : i32 to vector<1x256xi32>
    %58 = arith.addi %8, %57 : vector<1x256xi32>
    %c0_i32_22 = arith.constant 0 : i32
    %59 = vector.broadcast %c0_i32_22 : i32 to vector<1x256xi32>
    %60 = arith.cmpi sge, %58, %59 : vector<1x256xi32>
    %c2_i32_23 = arith.constant 2 : i32
    %61 = vector.broadcast %c2_i32_23 : i32 to vector<1x256xi32>
    %62 = arith.addi %8, %61 : vector<1x256xi32>
    %c16_i32_24 = arith.constant 16 : i32
    %63 = vector.broadcast %c16_i32_24 : i32 to vector<1x256xi32>
    %64 = arith.cmpi slt, %62, %63 : vector<1x256xi32>
    %65 = arith.andi %60, %64 : vector<1x256xi1>
    %cst_25 = arith.constant 0.000000e+00 : f32
    %66 = vector.shape_cast %65 : vector<1x256xi1> to vector<1x256xi1>
    %67 = vector.broadcast %66 : vector<1x256xi1> to vector<4x256xi1>
    %68 = vector.broadcast %cst_25 : f32 to vector<4x256xf32>
    %69 = arith.select %67, %56, %68 : vector<4x256xi1>, vector<4x256xf32>
    %c16 = arith.constant 16 : index
    %c0_26 = arith.constant 0 : index
    %70 = vector.load %arg7[%c16, %c0_26] : memref<100x256xf32, #tpu.memory_space<vmem>>, vector<4x256xf32>
    tpu.vector_store %arg7[%c16, %c0_26], %69 {strides = array<i32>} : memref<100x256xf32, #tpu.memory_space<vmem>>, vector<4x256xf32>,
    %71 = vector.extract_strided_slice %5 {offsets = [0, 110], sizes = [4, 256], strides = [1, 1]} : vector<4x512xf32> to vector<4x256xf32>
    %c-2_i32_27 = arith.constant -2 : i32
    %72 = vector.broadcast %c-2_i32_27 : i32 to vector<1x256xi32>
    %73 = arith.addi %8, %72 : vector<1x256xi32>
    %c0_i32_28 = arith.constant 0 : i32
    %74 = vector.broadcast %c0_i32_28 : i32 to vector<1x256xi32>
    %75 = arith.cmpi sge, %73, %74 : vector<1x256xi32>
    %c-2_i32_29 = arith.constant -2 : i32
    %76 = vector.broadcast %c-2_i32_29 : i32 to vector<1x256xi32>
    %77 = arith.addi %8, %76 : vector<1x256xi32>
    %c16_i32_30 = arith.constant 16 : i32
    %78 = vector.broadcast %c16_i32_30 : i32 to vector<1x256xi32>
    %79 = arith.cmpi slt, %77, %78 : vector<1x256xi32>
    %80 = arith.andi %75, %79 : vector<1x256xi1>
    %cst_31 = arith.constant 0.000000e+00 : f32
    %81 = vector.shape_cast %80 : vector<1x256xi1> to vector<1x256xi1>
    %82 = vector.broadcast %81 : vector<1x256xi1> to vector<4x256xi1>
    %83 = vector.broadcast %cst_31 : f32 to vector<4x256xf32>
    %84 = arith.select %82, %71, %83 : vector<4x256xi1>, vector<4x256xf32>
    %c20 = arith.constant 20 : index
    %c0_32 = arith.constant 0 : index
    %85 = vector.load %arg7[%c20, %c0_32] : memref<100x256xf32, #tpu.memory_space<vmem>>, vector<4x256xf32>
    tpu.vector_store %arg7[%c20, %c0_32], %84 {strides = array<i32>} : memref<100x256xf32, #tpu.memory_space<vmem>>, vector<4x256xf32>,
    %86 = vector.extract_strided_slice %5 {offsets = [0, 111], sizes = [4, 256], strides = [1, 1]} : vector<4x512xf32> to vector<4x256xf32>
    %c-1_i32_33 = arith.constant -1 : i32
    %87 = vector.broadcast %c-1_i32_33 : i32 to vector<1x256xi32>
    %88 = arith.addi %8, %87 : vector<1x256xi32>
    %c0_i32_34 = arith.constant 0 : i32
    %89 = vector.broadcast %c0_i32_34 : i32 to vector<1x256xi32>
    %90 = arith.cmpi sge, %88, %89 : vector<1x256xi32>
    %c-1_i32_35 = arith.constant -1 : i32
    %91 = vector.broadcast %c-1_i32_35 : i32 to vector<1x256xi32>
    %92 = arith.addi %8, %91 : vector<1x256xi32>
    %c16_i32_36 = arith.constant 16 : i32
    %93 = vector.broadcast %c16_i32_36 : i32 to vector<1x256xi32>
    %94 = arith.cmpi slt, %92, %93 : vector<1x256xi32>
    %95 = arith.andi %90, %94 : vector<1x256xi1>
    %cst_37 = arith.constant 0.000000e+00 : f32
    %96 = vector.shape_cast %95 : vector<1x256xi1> to vector<1x256xi1>
    %97 = vector.broadcast %96 : vector<1x256xi1> to vector<4x256xi1>
    %98 = vector.broadcast %cst_37 : f32 to vector<4x256xf32>
    %99 = arith.select %97, %86, %98 : vector<4x256xi1>, vector<4x256xf32>
    %c24 = arith.constant 24 : index
    %c0_38 = arith.constant 0 : index
    %100 = vector.load %arg7[%c24, %c0_38] : memref<100x256xf32, #tpu.memory_space<vmem>>, vector<4x256xf32>
    tpu.vector_store %arg7[%c24, %c0_38], %99 {strides = array<i32>} : memref<100x256xf32, #tpu.memory_space<vmem>>, vector<4x256xf32>,
    %101 = vector.extract_strided_slice %5 {offsets = [0, 112], sizes = [4, 256], strides = [1, 1]} : vector<4x512xf32> to vector<4x256xf32>
    %c28 = arith.constant 28 : index
    %c0_39 = arith.constant 0 : index
    %102 = vector.load %arg7[%c28, %c0_39] : memref<100x256xf32, #tpu.memory_space<vmem>>, vector<4x256xf32>
    tpu.vector_store %arg7[%c28, %c0_39], %101 {strides = array<i32>} : memref<100x256xf32, #tpu.memory_space<vmem>>, vector<4x256xf32>,
    %103 = vector.extract_strided_slice %5 {offsets = [0, 113], sizes = [4, 256], strides = [1, 1]} : vector<4x512xf32> to vector<4x256xf32>
    %c1_i32_40 = arith.constant 1 : i32
    %104 = vector.broadcast %c1_i32_40 : i32 to vector<1x256xi32>
    %105 = arith.addi %8, %104 : vector<1x256xi32>
    %c0_i32_41 = arith.constant 0 : i32
    %106 = vector.broadcast %c0_i32_41 : i32 to vector<1x256xi32>
    %107 = arith.cmpi sge, %105, %106 : vector<1x256xi32>
    %c1_i32_42 = arith.constant 1 : i32
    %108 = vector.broadcast %c1_i32_42 : i32 to vector<1x256xi32>
    %109 = arith.addi %8, %108 : vector<1x256xi32>
    %c16_i32_43 = arith.constant 16 : i32
    %110 = vector.broadcast %c16_i32_43 : i32 to vector<1x256xi32>
    %111 = arith.cmpi slt, %109, %110 : vector<1x256xi32>
    %112 = arith.andi %107, %111 : vector<1x256xi1>
    %cst_44 = arith.constant 0.000000e+00 : f32
    %113 = vector.shape_cast %112 : vector<1x256xi1> to vector<1x256xi1>
    %114 = vector.broadcast %113 : vector<1x256xi1> to vector<4x256xi1>
    %115 = vector.broadcast %cst_44 : f32 to vector<4x256xf32>
    %116 = arith.select %114, %103, %115 : vector<4x256xi1>, vector<4x256xf32>
    %c32 = arith.constant 32 : index
    %c0_45 = arith.constant 0 : index
    %117 = vector.load %arg7[%c32, %c0_45] : memref<100x256xf32, #tpu.memory_space<vmem>>, vector<4x256xf32>
    tpu.vector_store %arg7[%c32, %c0_45], %116 {strides = array<i32>} : memref<100x256xf32, #tpu.memory_space<vmem>>, vector<4x256xf32>,
    %118 = vector.extract_strided_slice %5 {offsets = [0, 114], sizes = [4, 256], strides = [1, 1]} : vector<4x512xf32> to vector<4x256xf32>
    %c2_i32_46 = arith.constant 2 : i32
    %119 = vector.broadcast %c2_i32_46 : i32 to vector<1x256xi32>
    %120 = arith.addi %8, %119 : vector<1x256xi32>
    %c0_i32_47 = arith.constant 0 : i32
    %121 = vector.broadcast %c0_i32_47 : i32 to vector<1x256xi32>
    %122 = arith.cmpi sge, %120, %121 : vector<1x256xi32>
    %c2_i32_48 = arith.constant 2 : i32
    %123 = vector.broadcast %c2_i32_48 : i32 to vector<1x256xi32>
    %124 = arith.addi %8, %123 : vector<1x256xi32>
    %c16_i32_49 = arith.constant 16 : i32
    %125 = vector.broadcast %c16_i32_49 : i32 to vector<1x256xi32>
    %126 = arith.cmpi slt, %124, %125 : vector<1x256xi32>
    %127 = arith.andi %122, %126 : vector<1x256xi1>
    %cst_50 = arith.constant 0.000000e+00 : f32
    %128 = vector.shape_cast %127 : vector<1x256xi1> to vector<1x256xi1>
    %129 = vector.broadcast %128 : vector<1x256xi1> to vector<4x256xi1>
    %130 = vector.broadcast %cst_50 : f32 to vector<4x256xf32>
    %131 = arith.select %129, %118, %130 : vector<4x256xi1>, vector<4x256xf32>
    %c36 = arith.constant 36 : index
    %c0_51 = arith.constant 0 : index
    %132 = vector.load %arg7[%c36, %c0_51] : memref<100x256xf32, #tpu.memory_space<vmem>>, vector<4x256xf32>
    tpu.vector_store %arg7[%c36, %c0_51], %131 {strides = array<i32>} : memref<100x256xf32, #tpu.memory_space<vmem>>, vector<4x256xf32>,
    %133 = vector.extract_strided_slice %5 {offsets = [0, 126], sizes = [4, 256], strides = [1, 1]} : vector<4x512xf32> to vector<4x256xf32>
    %c-2_i32_52 = arith.constant -2 : i32
    %134 = vector.broadcast %c-2_i32_52 : i32 to vector<1x256xi32>
    %135 = arith.addi %8, %134 : vector<1x256xi32>
    %c0_i32_53 = arith.constant 0 : i32
    %136 = vector.broadcast %c0_i32_53 : i32 to vector<1x256xi32>
    %137 = arith.cmpi sge, %135, %136 : vector<1x256xi32>
    %c-2_i32_54 = arith.constant -2 : i32
    %138 = vector.broadcast %c-2_i32_54 : i32 to vector<1x256xi32>
    %139 = arith.addi %8, %138 : vector<1x256xi32>
    %c16_i32_55 = arith.constant 16 : i32
    %140 = vector.broadcast %c16_i32_55 : i32 to vector<1x256xi32>
    %141 = arith.cmpi slt, %139, %140 : vector<1x256xi32>
    %142 = arith.andi %137, %141 : vector<1x256xi1>
    %cst_56 = arith.constant 0.000000e+00 : f32
    %143 = vector.shape_cast %142 : vector<1x256xi1> to vector<1x256xi1>
    %144 = vector.broadcast %143 : vector<1x256xi1> to vector<4x256xi1>
    %145 = vector.broadcast %cst_56 : f32 to vector<4x256xf32>
    %146 = arith.select %144, %133, %145 : vector<4x256xi1>, vector<4x256xf32>
    %c40 = arith.constant 40 : index
    %c0_57 = arith.constant 0 : index
    %147 = vector.load %arg7[%c40, %c0_57] : memref<100x256xf32, #tpu.memory_space<vmem>>, vector<4x256xf32>
    tpu.vector_store %arg7[%c40, %c0_57], %146 {strides = array<i32>} : memref<100x256xf32, #tpu.memory_space<vmem>>, vector<4x256xf32>,
    %148 = vector.extract_strided_slice %5 {offsets = [0, 127], sizes = [4, 256], strides = [1, 1]} : vector<4x512xf32> to vector<4x256xf32>
    %c-1_i32_58 = arith.constant -1 : i32
    %149 = vector.broadcast %c-1_i32_58 : i32 to vector<1x256xi32>
    %150 = arith.addi %8, %149 : vector<1x256xi32>
    %c0_i32_59 = arith.constant 0 : i32
    %151 = vector.broadcast %c0_i32_59 : i32 to vector<1x256xi32>
    %152 = arith.cmpi sge, %150, %151 : vector<1x256xi32>
    %c-1_i32_60 = arith.constant -1 : i32
    %153 = vector.broadcast %c-1_i32_60 : i32 to vector<1x256xi32>
    %154 = arith.addi %8, %153 : vector<1x256xi32>
    %c16_i32_61 = arith.constant 16 : i32
    %155 = vector.broadcast %c16_i32_61 : i32 to vector<1x256xi32>
    %156 = arith.cmpi slt, %154, %155 : vector<1x256xi32>
    %157 = arith.andi %152, %156 : vector<1x256xi1>
    %cst_62 = arith.constant 0.000000e+00 : f32
    %158 = vector.shape_cast %157 : vector<1x256xi1> to vector<1x256xi1>
    %159 = vector.broadcast %158 : vector<1x256xi1> to vector<4x256xi1>
    %160 = vector.broadcast %cst_62 : f32 to vector<4x256xf32>
    %161 = arith.select %159, %148, %160 : vector<4x256xi1>, vector<4x256xf32>
    %c44 = arith.constant 44 : index
    %c0_63 = arith.constant 0 : index
    %162 = vector.load %arg7[%c44, %c0_63] : memref<100x256xf32, #tpu.memory_space<vmem>>, vector<4x256xf32>
    tpu.vector_store %arg7[%c44, %c0_63], %161 {strides = array<i32>} : memref<100x256xf32, #tpu.memory_space<vmem>>, vector<4x256xf32>,
    %163 = vector.extract_strided_slice %5 {offsets = [0, 128], sizes = [4, 256], strides = [1, 1]} : vector<4x512xf32> to vector<4x256xf32>
    %c48 = arith.constant 48 : index
    %c0_64 = arith.constant 0 : index
    %164 = vector.load %arg7[%c48, %c0_64] : memref<100x256xf32, #tpu.memory_space<vmem>>, vector<4x256xf32>
    tpu.vector_store %arg7[%c48, %c0_64], %163 {strides = array<i32>} : memref<100x256xf32, #tpu.memory_space<vmem>>, vector<4x256xf32>,
    %165 = vector.extract_strided_slice %5 {offsets = [0, 129], sizes = [4, 256], strides = [1, 1]} : vector<4x512xf32> to vector<4x256xf32>
    %c1_i32_65 = arith.constant 1 : i32
    %166 = vector.broadcast %c1_i32_65 : i32 to vector<1x256xi32>
    %167 = arith.addi %8, %166 : vector<1x256xi32>
    %c0_i32_66 = arith.constant 0 : i32
    %168 = vector.broadcast %c0_i32_66 : i32 to vector<1x256xi32>
    %169 = arith.cmpi sge, %167, %168 : vector<1x256xi32>
    %c1_i32_67 = arith.constant 1 : i32
    %170 = vector.broadcast %c1_i32_67 : i32 to vector<1x256xi32>
    %171 = arith.addi %8, %170 : vector<1x256xi32>
    %c16_i32_68 = arith.constant 16 : i32
    %172 = vector.broadcast %c16_i32_68 : i32 to vector<1x256xi32>
    %173 = arith.cmpi slt, %171, %172 : vector<1x256xi32>
    %174 = arith.andi %169, %173 : vector<1x256xi1>
    %cst_69 = arith.constant 0.000000e+00 : f32
    %175 = vector.shape_cast %174 : vector<1x256xi1> to vector<1x256xi1>
    %176 = vector.broadcast %175 : vector<1x256xi1> to vector<4x256xi1>
    %177 = vector.broadcast %cst_69 : f32 to vector<4x256xf32>
    %178 = arith.select %176, %165, %177 : vector<4x256xi1>, vector<4x256xf32>
    %c52 = arith.constant 52 : index
    %c0_70 = arith.constant 0 : index
    %179 = vector.load %arg7[%c52, %c0_70] : memref<100x256xf32, #tpu.memory_space<vmem>>, vector<4x256xf32>
    tpu.vector_store %arg7[%c52, %c0_70], %178 {strides = array<i32>} : memref<100x256xf32, #tpu.memory_space<vmem>>, vector<4x256xf32>,
    %180 = vector.extract_strided_slice %5 {offsets = [0, 130], sizes = [4, 256], strides = [1, 1]} : vector<4x512xf32> to vector<4x256xf32>
    %c2_i32_71 = arith.constant 2 : i32
    %181 = vector.broadcast %c2_i32_71 : i32 to vector<1x256xi32>
    %182 = arith.addi %8, %181 : vector<1x256xi32>
    %c0_i32_72 = arith.constant 0 : i32
    %183 = vector.broadcast %c0_i32_72 : i32 to vector<1x256xi32>
    %184 = arith.cmpi sge, %182, %183 : vector<1x256xi32>
    %c2_i32_73 = arith.constant 2 : i32
    %185 = vector.broadcast %c2_i32_73 : i32 to vector<1x256xi32>
    %186 = arith.addi %8, %185 : vector<1x256xi32>
    %c16_i32_74 = arith.constant 16 : i32
    %187 = vector.broadcast %c16_i32_74 : i32 to vector<1x256xi32>
    %188 = arith.cmpi slt, %186, %187 : vector<1x256xi32>
    %189 = arith.andi %184, %188 : vector<1x256xi1>
    %cst_75 = arith.constant 0.000000e+00 : f32
    %190 = vector.shape_cast %189 : vector<1x256xi1> to vector<1x256xi1>
    %191 = vector.broadcast %190 : vector<1x256xi1> to vector<4x256xi1>
    %192 = vector.broadcast %cst_75 : f32 to vector<4x256xf32>
    %193 = arith.select %191, %180, %192 : vector<4x256xi1>, vector<4x256xf32>
    %c56 = arith.constant 56 : index
    %c0_76 = arith.constant 0 : index
    %194 = vector.load %arg7[%c56, %c0_76] : memref<100x256xf32, #tpu.memory_space<vmem>>, vector<4x256xf32>
    tpu.vector_store %arg7[%c56, %c0_76], %193 {strides = array<i32>} : memref<100x256xf32, #tpu.memory_space<vmem>>, vector<4x256xf32>,
    %195 = vector.extract_strided_slice %5 {offsets = [0, 142], sizes = [4, 256], strides = [1, 1]} : vector<4x512xf32> to vector<4x256xf32>
    %c-2_i32_77 = arith.constant -2 : i32
    %196 = vector.broadcast %c-2_i32_77 : i32 to vector<1x256xi32>
    %197 = arith.addi %8, %196 : vector<1x256xi32>
    %c0_i32_78 = arith.constant 0 : i32
    %198 = vector.broadcast %c0_i32_78 : i32 to vector<1x256xi32>
    %199 = arith.cmpi sge, %197, %198 : vector<1x256xi32>
    %c-2_i32_79 = arith.constant -2 : i32
    %200 = vector.broadcast %c-2_i32_79 : i32 to vector<1x256xi32>
    %201 = arith.addi %8, %200 : vector<1x256xi32>
    %c16_i32_80 = arith.constant 16 : i32
    %202 = vector.broadcast %c16_i32_80 : i32 to vector<1x256xi32>
    %203 = arith.cmpi slt, %201, %202 : vector<1x256xi32>
    %204 = arith.andi %199, %203 : vector<1x256xi1>
    %cst_81 = arith.constant 0.000000e+00 : f32
    %205 = vector.shape_cast %204 : vector<1x256xi1> to vector<1x256xi1>
    %206 = vector.broadcast %205 : vector<1x256xi1> to vector<4x256xi1>
    %207 = vector.broadcast %cst_81 : f32 to vector<4x256xf32>
    %208 = arith.select %206, %195, %207 : vector<4x256xi1>, vector<4x256xf32>
    %c60 = arith.constant 60 : index
    %c0_82 = arith.constant 0 : index
    %209 = vector.load %arg7[%c60, %c0_82] : memref<100x256xf32, #tpu.memory_space<vmem>>, vector<4x256xf32>
    tpu.vector_store %arg7[%c60, %c0_82], %208 {strides = array<i32>} : memref<100x256xf32, #tpu.memory_space<vmem>>, vector<4x256xf32>,
    %210 = vector.extract_strided_slice %5 {offsets = [0, 143], sizes = [4, 256], strides = [1, 1]} : vector<4x512xf32> to vector<4x256xf32>
    %c-1_i32_83 = arith.constant -1 : i32
    %211 = vector.broadcast %c-1_i32_83 : i32 to vector<1x256xi32>
    %212 = arith.addi %8, %211 : vector<1x256xi32>
    %c0_i32_84 = arith.constant 0 : i32
    %213 = vector.broadcast %c0_i32_84 : i32 to vector<1x256xi32>
    %214 = arith.cmpi sge, %212, %213 : vector<1x256xi32>
    %c-1_i32_85 = arith.constant -1 : i32
    %215 = vector.broadcast %c-1_i32_85 : i32 to vector<1x256xi32>
    %216 = arith.addi %8, %215 : vector<1x256xi32>
    %c16_i32_86 = arith.constant 16 : i32
    %217 = vector.broadcast %c16_i32_86 : i32 to vector<1x256xi32>
    %218 = arith.cmpi slt, %216, %217 : vector<1x256xi32>
    %219 = arith.andi %214, %218 : vector<1x256xi1>
    %cst_87 = arith.constant 0.000000e+00 : f32
    %220 = vector.shape_cast %219 : vector<1x256xi1> to vector<1x256xi1>
    %221 = vector.broadcast %220 : vector<1x256xi1> to vector<4x256xi1>
    %222 = vector.broadcast %cst_87 : f32 to vector<4x256xf32>
    %223 = arith.select %221, %210, %222 : vector<4x256xi1>, vector<4x256xf32>
    %c64 = arith.constant 64 : index
    %c0_88 = arith.constant 0 : index
    %224 = vector.load %arg7[%c64, %c0_88] : memref<100x256xf32, #tpu.memory_space<vmem>>, vector<4x256xf32>
    tpu.vector_store %arg7[%c64, %c0_88], %223 {strides = array<i32>} : memref<100x256xf32, #tpu.memory_space<vmem>>, vector<4x256xf32>,
    %225 = vector.extract_strided_slice %5 {offsets = [0, 144], sizes = [4, 256], strides = [1, 1]} : vector<4x512xf32> to vector<4x256xf32>
    %c68 = arith.constant 68 : index
    %c0_89 = arith.constant 0 : index
    %226 = vector.load %arg7[%c68, %c0_89] : memref<100x256xf32, #tpu.memory_space<vmem>>, vector<4x256xf32>
    tpu.vector_store %arg7[%c68, %c0_89], %225 {strides = array<i32>} : memref<100x256xf32, #tpu.memory_space<vmem>>, vector<4x256xf32>,
    %227 = vector.extract_strided_slice %5 {offsets = [0, 145], sizes = [4, 256], strides = [1, 1]} : vector<4x512xf32> to vector<4x256xf32>
    %c1_i32_90 = arith.constant 1 : i32
    %228 = vector.broadcast %c1_i32_90 : i32 to vector<1x256xi32>
    %229 = arith.addi %8, %228 : vector<1x256xi32>
    %c0_i32_91 = arith.constant 0 : i32
    %230 = vector.broadcast %c0_i32_91 : i32 to vector<1x256xi32>
    %231 = arith.cmpi sge, %229, %230 : vector<1x256xi32>
    %c1_i32_92 = arith.constant 1 : i32
    %232 = vector.broadcast %c1_i32_92 : i32 to vector<1x256xi32>
    %233 = arith.addi %8, %232 : vector<1x256xi32>
    %c16_i32_93 = arith.constant 16 : i32
    %234 = vector.broadcast %c16_i32_93 : i32 to vector<1x256xi32>
    %235 = arith.cmpi slt, %233, %234 : vector<1x256xi32>
    %236 = arith.andi %231, %235 : vector<1x256xi1>
    %cst_94 = arith.constant 0.000000e+00 : f32
    %237 = vector.shape_cast %236 : vector<1x256xi1> to vector<1x256xi1>
    %238 = vector.broadcast %237 : vector<1x256xi1> to vector<4x256xi1>
    %239 = vector.broadcast %cst_94 : f32 to vector<4x256xf32>
    %240 = arith.select %238, %227, %239 : vector<4x256xi1>, vector<4x256xf32>
    %c72 = arith.constant 72 : index
    %c0_95 = arith.constant 0 : index
    %241 = vector.load %arg7[%c72, %c0_95] : memref<100x256xf32, #tpu.memory_space<vmem>>, vector<4x256xf32>
    tpu.vector_store %arg7[%c72, %c0_95], %240 {strides = array<i32>} : memref<100x256xf32, #tpu.memory_space<vmem>>, vector<4x256xf32>,
    %242 = vector.extract_strided_slice %5 {offsets = [0, 146], sizes = [4, 256], strides = [1, 1]} : vector<4x512xf32> to vector<4x256xf32>
    %c2_i32_96 = arith.constant 2 : i32
    %243 = vector.broadcast %c2_i32_96 : i32 to vector<1x256xi32>
    %244 = arith.addi %8, %243 : vector<1x256xi32>
    %c0_i32_97 = arith.constant 0 : i32
    %245 = vector.broadcast %c0_i32_97 : i32 to vector<1x256xi32>
    %246 = arith.cmpi sge, %244, %245 : vector<1x256xi32>
    %c2_i32_98 = arith.constant 2 : i32
    %247 = vector.broadcast %c2_i32_98 : i32 to vector<1x256xi32>
    %248 = arith.addi %8, %247 : vector<1x256xi32>
    %c16_i32_99 = arith.constant 16 : i32
    %249 = vector.broadcast %c16_i32_99 : i32 to vector<1x256xi32>
    %250 = arith.cmpi slt, %248, %249 : vector<1x256xi32>
    %251 = arith.andi %246, %250 : vector<1x256xi1>
    %cst_100 = arith.constant 0.000000e+00 : f32
    %252 = vector.shape_cast %251 : vector<1x256xi1> to vector<1x256xi1>
    %253 = vector.broadcast %252 : vector<1x256xi1> to vector<4x256xi1>
    %254 = vector.broadcast %cst_100 : f32 to vector<4x256xf32>
    %255 = arith.select %253, %242, %254 : vector<4x256xi1>, vector<4x256xf32>
    %c76 = arith.constant 76 : index
    %c0_101 = arith.constant 0 : index
    %256 = vector.load %arg7[%c76, %c0_101] : memref<100x256xf32, #tpu.memory_space<vmem>>, vector<4x256xf32>
    tpu.vector_store %arg7[%c76, %c0_101], %255 {strides = array<i32>} : memref<100x256xf32, #tpu.memory_space<vmem>>, vector<4x256xf32>,
    %257 = vector.extract_strided_slice %5 {offsets = [0, 158], sizes = [4, 256], strides = [1, 1]} : vector<4x512xf32> to vector<4x256xf32>
    %c-2_i32_102 = arith.constant -2 : i32
    %258 = vector.broadcast %c-2_i32_102 : i32 to vector<1x256xi32>
    %259 = arith.addi %8, %258 : vector<1x256xi32>
    %c0_i32_103 = arith.constant 0 : i32
    %260 = vector.broadcast %c0_i32_103 : i32 to vector<1x256xi32>
    %261 = arith.cmpi sge, %259, %260 : vector<1x256xi32>
    %c-2_i32_104 = arith.constant -2 : i32
    %262 = vector.broadcast %c-2_i32_104 : i32 to vector<1x256xi32>
    %263 = arith.addi %8, %262 : vector<1x256xi32>
    %c16_i32_105 = arith.constant 16 : i32
    %264 = vector.broadcast %c16_i32_105 : i32 to vector<1x256xi32>
    %265 = arith.cmpi slt, %263, %264 : vector<1x256xi32>
    %266 = arith.andi %261, %265 : vector<1x256xi1>
    %cst_106 = arith.constant 0.000000e+00 : f32
    %267 = vector.shape_cast %266 : vector<1x256xi1> to vector<1x256xi1>
    %268 = vector.broadcast %267 : vector<1x256xi1> to vector<4x256xi1>
    %269 = vector.broadcast %cst_106 : f32 to vector<4x256xf32>
    %270 = arith.select %268, %257, %269 : vector<4x256xi1>, vector<4x256xf32>
    %c80 = arith.constant 80 : index
    %c0_107 = arith.constant 0 : index
    %271 = vector.load %arg7[%c80, %c0_107] : memref<100x256xf32, #tpu.memory_space<vmem>>, vector<4x256xf32>
    tpu.vector_store %arg7[%c80, %c0_107], %270 {strides = array<i32>} : memref<100x256xf32, #tpu.memory_space<vmem>>, vector<4x256xf32>,
    %272 = vector.extract_strided_slice %5 {offsets = [0, 159], sizes = [4, 256], strides = [1, 1]} : vector<4x512xf32> to vector<4x256xf32>
    %c-1_i32_108 = arith.constant -1 : i32
    %273 = vector.broadcast %c-1_i32_108 : i32 to vector<1x256xi32>
    %274 = arith.addi %8, %273 : vector<1x256xi32>
    %c0_i32_109 = arith.constant 0 : i32
    %275 = vector.broadcast %c0_i32_109 : i32 to vector<1x256xi32>
    %276 = arith.cmpi sge, %274, %275 : vector<1x256xi32>
    %c-1_i32_110 = arith.constant -1 : i32
    %277 = vector.broadcast %c-1_i32_110 : i32 to vector<1x256xi32>
    %278 = arith.addi %8, %277 : vector<1x256xi32>
    %c16_i32_111 = arith.constant 16 : i32
    %279 = vector.broadcast %c16_i32_111 : i32 to vector<1x256xi32>
    %280 = arith.cmpi slt, %278, %279 : vector<1x256xi32>
    %281 = arith.andi %276, %280 : vector<1x256xi1>
    %cst_112 = arith.constant 0.000000e+00 : f32
    %282 = vector.shape_cast %281 : vector<1x256xi1> to vector<1x256xi1>
    %283 = vector.broadcast %282 : vector<1x256xi1> to vector<4x256xi1>
    %284 = vector.broadcast %cst_112 : f32 to vector<4x256xf32>
    %285 = arith.select %283, %272, %284 : vector<4x256xi1>, vector<4x256xf32>
    %c84 = arith.constant 84 : index
    %c0_113 = arith.constant 0 : index
    %286 = vector.load %arg7[%c84, %c0_113] : memref<100x256xf32, #tpu.memory_space<vmem>>, vector<4x256xf32>
    tpu.vector_store %arg7[%c84, %c0_113], %285 {strides = array<i32>} : memref<100x256xf32, #tpu.memory_space<vmem>>, vector<4x256xf32>,
    %287 = vector.extract_strided_slice %5 {offsets = [0, 160], sizes = [4, 256], strides = [1, 1]} : vector<4x512xf32> to vector<4x256xf32>
    %c88 = arith.constant 88 : index
    %c0_114 = arith.constant 0 : index
    %288 = vector.load %arg7[%c88, %c0_114] : memref<100x256xf32, #tpu.memory_space<vmem>>, vector<4x256xf32>
    tpu.vector_store %arg7[%c88, %c0_114], %287 {strides = array<i32>} : memref<100x256xf32, #tpu.memory_space<vmem>>, vector<4x256xf32>,
    %289 = vector.extract_strided_slice %5 {offsets = [0, 161], sizes = [4, 256], strides = [1, 1]} : vector<4x512xf32> to vector<4x256xf32>
    %c1_i32_115 = arith.constant 1 : i32
    %290 = vector.broadcast %c1_i32_115 : i32 to vector<1x256xi32>
    %291 = arith.addi %8, %290 : vector<1x256xi32>
    %c0_i32_116 = arith.constant 0 : i32
    %292 = vector.broadcast %c0_i32_116 : i32 to vector<1x256xi32>
    %293 = arith.cmpi sge, %291, %292 : vector<1x256xi32>
    %c1_i32_117 = arith.constant 1 : i32
    %294 = vector.broadcast %c1_i32_117 : i32 to vector<1x256xi32>
    %295 = arith.addi %8, %294 : vector<1x256xi32>
    %c16_i32_118 = arith.constant 16 : i32
    %296 = vector.broadcast %c16_i32_118 : i32 to vector<1x256xi32>
    %297 = arith.cmpi slt, %295, %296 : vector<1x256xi32>
    %298 = arith.andi %293, %297 : vector<1x256xi1>
    %cst_119 = arith.constant 0.000000e+00 : f32
    %299 = vector.shape_cast %298 : vector<1x256xi1> to vector<1x256xi1>
    %300 = vector.broadcast %299 : vector<1x256xi1> to vector<4x256xi1>
    %301 = vector.broadcast %cst_119 : f32 to vector<4x256xf32>
    %302 = arith.select %300, %289, %301 : vector<4x256xi1>, vector<4x256xf32>
    %c92 = arith.constant 92 : index
    %c0_120 = arith.constant 0 : index
    %303 = vector.load %arg7[%c92, %c0_120] : memref<100x256xf32, #tpu.memory_space<vmem>>, vector<4x256xf32>
    tpu.vector_store %arg7[%c92, %c0_120], %302 {strides = array<i32>} : memref<100x256xf32, #tpu.memory_space<vmem>>, vector<4x256xf32>,
    %304 = vector.extract_strided_slice %5 {offsets = [0, 162], sizes = [4, 256], strides = [1, 1]} : vector<4x512xf32> to vector<4x256xf32>
    %c2_i32_121 = arith.constant 2 : i32
    %305 = vector.broadcast %c2_i32_121 : i32 to vector<1x256xi32>
    %306 = arith.addi %8, %305 : vector<1x256xi32>
    %c0_i32_122 = arith.constant 0 : i32
    %307 = vector.broadcast %c0_i32_122 : i32 to vector<1x256xi32>
    %308 = arith.cmpi sge, %306, %307 : vector<1x256xi32>
    %c2_i32_123 = arith.constant 2 : i32
    %309 = vector.broadcast %c2_i32_123 : i32 to vector<1x256xi32>
    %310 = arith.addi %8, %309 : vector<1x256xi32>
    %c16_i32_124 = arith.constant 16 : i32
    %311 = vector.broadcast %c16_i32_124 : i32 to vector<1x256xi32>
    %312 = arith.cmpi slt, %310, %311 : vector<1x256xi32>
    %313 = arith.andi %308, %312 : vector<1x256xi1>
    %cst_125 = arith.constant 0.000000e+00 : f32
    %314 = vector.shape_cast %313 : vector<1x256xi1> to vector<1x256xi1>
    %315 = vector.broadcast %314 : vector<1x256xi1> to vector<4x256xi1>
    %316 = vector.broadcast %cst_125 : f32 to vector<4x256xf32>
    %317 = arith.select %315, %304, %316 : vector<4x256xi1>, vector<4x256xf32>
    %c96 = arith.constant 96 : index
    %c0_126 = arith.constant 0 : index
    %318 = vector.load %arg7[%c96, %c0_126] : memref<100x256xf32, #tpu.memory_space<vmem>>, vector<4x256xf32>
    tpu.vector_store %arg7[%c96, %c0_126], %317 {strides = array<i32>} : memref<100x256xf32, #tpu.memory_space<vmem>>, vector<4x256xf32>,
    %c0_127 = arith.constant 0 : index
    %c0_128 = arith.constant 0 : index
    %319 = vector.load %arg2[%c0_127, %c0_128] : memref<4x100xf32, #tpu.memory_space<vmem>>, vector<4x100xf32>
    %c0_129 = arith.constant 0 : index
    %c0_130 = arith.constant 0 : index
    %320 = vector.load %arg7[%c0_129, %c0_130] : memref<100x256xf32, #tpu.memory_space<vmem>>, vector<100x256xf32>
    %cst_131 = arith.constant dense<0.000000e+00> : vector<4x256xf32>
    %321 = tpu.matmul %319, %320, %cst_131 {dimension_numbers = #tpu.dot_dimension_numbers<[1], [0], [0], [1], [0, 0, 1, 1], [], []>} : vector<4x100xf32>, vector<100x256xf32>, vector<4x256xf32> -> vector<4x256xf32>
    %c0_132 = arith.constant 0 : index
    %c0_133 = arith.constant 0 : index
    %322 = vector.load %arg3[%c0_132, %c0_133] : memref<4x1xf32, #tpu.memory_space<vmem>>, vector<4x1xf32>
    %323 = vector.broadcast %322 : vector<4x1xf32> to vector<4x256xf32>
    %324 = arith.addf %321, %323 : vector<4x256xf32>
    %c0_134 = arith.constant 0 : index
    %325 = memref.load %arg4[%c0_134] : memref<1xf32, #tpu.memory_space<smem>>
    %cst_135 = arith.constant 0.000000e+00 : f32
    %326 = vector.broadcast %cst_135 : f32 to vector<4x256xf32>
    %327 = arith.cmpf oge, %324, %326 : vector<4x256xf32>
    %328 = vector.broadcast %325 : f32 to vector<4x256xf32>
    %329 = arith.mulf %328, %324 : vector<4x256xf32>
    %330 = arith.select %327, %324, %329 : vector<4x256xi1>, vector<4x256xf32>
    %c0_136 = arith.constant 0 : index
    %c0_137 = arith.constant 0 : index
    %c0_138 = arith.constant 0 : index
    %331 = vector.load %arg5[%c0_136, %c0_137, %c0_138] : memref<1x4x256xf32, #tpu.memory_space<vmem>>, vector<1x4x256xf32>
    %332 = vector.shape_cast %331 : vector<1x4x256xf32> to vector<4x256xf32>
    %333 = vector.shape_cast %330 : vector<4x256xf32> to vector<1x4x256xf32>
    tpu.vector_store %arg5[%c0_136, %c0_137, %c0_138], %333 {strides = array<i32>} : memref<1x4x256xf32, #tpu.memory_space<vmem>>, vector<1x4x256xf32>,
    return
  }
  func.func @transform_0(%arg0: i32) -> (i32, i32, i32) {
    %c0_i32 = arith.constant 0 : i32
    %c0_i32_0 = arith.constant 0 : i32
    %c0_i32_1 = arith.constant 0 : i32
    return %arg0, %c0_i32, %c0_i32_0 : i32, i32, i32
  }
  func.func @transform_1(%arg0: i32) -> (i32, i32) {
    %c0_i32 = arith.constant 0 : i32
    %c0_i32_0 = arith.constant 0 : i32
    %c0_i32_1 = arith.constant 0 : i32
    return %c0_i32, %c0_i32_0 : i32, i32
  }
  func.func @transform_2(%arg0: i32) -> (i32, i32) {
    %c0_i32 = arith.constant 0 : i32
    %c0_i32_0 = arith.constant 0 : i32
    %c0_i32_1 = arith.constant 0 : i32
    return %c0_i32, %c0_i32_0 : i32, i32
  }
  func.func @transform_3(%arg0: i32) -> i32 {
    %c0_i32 = arith.constant 0 : i32
    %c0_i32_0 = arith.constant 0 : i32
    return %c0_i32 : i32
  }
  func.func @transform_4(%arg0: i32) -> (i32, i32, i32) {
    %c0_i32 = arith.constant 0 : i32
    %c0_i32_0 = arith.constant 0 : i32
    %c0_i32_1 = arith.constant 0 : i32
    return %arg0, %c0_i32, %c0_i32_0 : i32, i32, i32
  }
}

</mosaic_0001>

<bundles_post_ra>
// kernel: lkconv_blk_forward.1
= control target key start
LH: loop header
LB: loop body
LE: loop exit
PB: predicated region body
PF: predicated region fallthrough
CT: control target
= control target key end

     0   :  { %s1003_s17 = smov 0   ;;  %s1258_s0 = inlined_call_operand.vmem [shape: f32[2,4,256], index: 0, kind: input, shape index: {}]   ;;  %s1259_s1 = inlined_call_operand.vmem [shape: f32[4,100], index: 1, kind: input, shape index: {}]   ;;  %s1260_s2 = inlined_call_operand.vmem [shape: f32[4,1], index: 2, kind: input, shape index: {}]   ;;  %s1261_s3 = inlined_call_operand.<no memory space> [shape: f32[1], index: 3, kind: input, shape index: {}]   ;;  %s1262_s4 = inlined_call_operand.vmem [shape: f32[2,4,256], index: 4, kind: output, shape index: {}]  }
   0x1   :  { %9 = sst [smem:[#allocation4]] %s1261_s3 }
   0x2 LB: > { %s862_s18 = sadd.s32 4294967295, %s947_s17   ;;  %p866_p0 = scmp.ge.s32.totalorder %s947_s17, 1  ;;  %s947_s17 = sphi %s1003_s17, %s15_s17  }
   0x3   : > { %p163_p1 = scmp.lt.s32.totalorder %s947_s17, 3 }
   0x5   : > { %p164_p2 = pnand %p866_p0, %p163_p1 }
   0x6   : > { %p189_p3 = scmp.lt.s32.totalorder (!%p164_p2), %s862_s18, 1  ;;  %v949_v0 = vmov (!%p164_p2), 0.0   ;;  %s950_s22 = smov (!%p164_p2), 31   ;;  %v205_v8 = vlaneseq (!%p164_p2)  ;;  %vm304_vm0 = vcmask (!%p164_p2), 252928   ;;  %vm258_vm1 = vcmask (!%p164_p2), 269312  }
   0x7   : > { %167 = sbr.rel (%p164_p2) target bundleno = 514 (0x202), region = 36  ;;  %199 = vst [vmem:[#allocation2] sm:$0xff] (!%p164_p2), %v949_v0  ;;  %200 = vst [vmem:[#allocation2 + $0x8] sm:$0xff] (!%p164_p2), %v949_v0  ;;  %787 = vmatprep.mubr.f32.mxu0 (!%p164_p2), %v949_v0  ;;  %s951_s23 = smov (!%p164_p2), 33   ;;  %vm231_vm8 = vcmask (!%p164_p2), 277504   ;;  %vm279_vm9 = vcmask (!%p164_p2), 261120  }
   0x8   : > { %s952_s24 = smov (!%p164_p2), 34   ;;  %s953_s25 = smov (!%p164_p2), 32   ;;  %v206_v9 = vand.u32 (!%p164_p2), 127, %v205_v8  ;;  %vm352_vm10 = vcmask (!%p164_p2), 146432   ;;  %v974_v55 = vmov (!%p164_p2), 0   ;;  %vm337_vm11 = vcmask (!%p164_p2), 244736  }
   0x9   : > { %s954_s26 = smov (!%p164_p2), 18   ;;  %s955_s27 = smov (!%p164_p2), 30   ;;  %936 = vset.pattern.permute.xlu0 (!%p164_p2), %v974_v55  ;;  %v706_v56 = vld [vmem:[%s1260_s2] sm:$0xf] (!%p164_p2)  ;;  %vm373_vm13 = vcmask (!%p164_p2), 138240   ;;  %vm390_vm15 = vcmask (!%p164_p2), 130048  }
   0xa   : > { %s956_s28 = smov (!%p164_p2), 17   ;;  %s957_s29 = smov (!%p164_p2), 16   ;;  %v207_v10 = vadd.s32 (!%p164_p2), 128, %v206_v9  ;;  %v1094_v13 = vand.u32 (!%p164_p2), 15, %v206_v9 }
   0xb   : > { %s958_s30 = smov (!%p164_p2), 14   ;;  %s959_s5 = smov (!%p164_p2), 1  }
   0xc   : > { %s960_s6 = smov (!%p164_p2), 15   ;;  %s961_s7 = smov (!%p164_p2), 2   ;;  %v1096_v14 = vand.u32 (!%p164_p2), 15, %v207_v10  ;;  %v1101_v17 = vadd.s32 (!%p164_p2), 1, %v1094_v13  ;;  %v1107_v19 = vadd.s32 (!%p164_p2), 4294967295, %v1094_v13  ;;  %v1113_v23 = vadd.s32 (!%p164_p2), 4294967294, %v1094_v13 }
   0xd   : > { %s962_s8 = smov (!%p164_p2), 127   ;;  %s963_s9 = smov (!%p164_p2), 114  }
   0xe   : > { %s1264_s18 = smov (!%p189_p3, %s862_s18), 1  ;;  %s964_s10 = smov 126   ;;  %v1104_v18 = vadd.s32 1, %v1096_v14  ;;  %v1110_v20 = vadd.s32 4294967295, %v1096_v14  ;;  %v1116_v24 = vadd.s32 4294967294, %v1096_v14  ;;  %vm290_vm2 = vcmp.lt.s32.totalorder %v1101_v17, 16 }
   0xf   : > { %s876_s3 = sshll.u32 %s1264_s18, 3  ;;  %s965_s11 = smov 110   ;;  %vm242_vm4 = vcmp.ge.s32.totalorder %v1107_v19, 0  ;;  %vm212_vm6 = vcmp.ge.s32.totalorder %v1113_v23, 0  ;;  %v1152_v54 = vadd.s32 2, %v1096_v14 }
  0x10   : > { %s193_s21 = scalar_lea.vmem %s1258_s0, %s876_s3  ;;  %s966_s12 = smov 113   ;;  %vm291_vm3 = vcmp.lt.s32.totalorder %v1104_v18, 16  ;;  %vm243_vm5 = vcmp.ge.s32.totalorder %v1110_v20, 0  ;;  %vm213_vm7 = vcmp.ge.s32.totalorder %v1116_v24, 0 }
  0x11   : > { %v201_v1 = vld [vmem:[%s193_s21] sm:$0xff]  ;;  %s967_s13 = smov 111   ;;  %s968_s14 = smov 112   ;;  %vm324_vm12 = vcmp.lt.s32.totalorder %v1152_v54, 16 }
  0x12   : > { %202 = vst [vmem:[#allocation2 + $0x4] sm:$0xff] %v201_v1  ;;  %s969_s15 = smov 97   ;;  %s970_s16 = smov 95  }
  0x13   : > { %s971_s19 = smov 98   ;;  %s972_s20 = smov 96  }
  0x14   : > { %s973_s21 = smov 94  }
  0x19   : > { %v1019_v2 = vld [vmem:[#allocation2 + $0x8] sm:$0xff]  ;;  %v1021_v3 = vld [vmem:[#allocation2] sm:$0xff] }
  0x1a   : > { %302 = vrot.lane.b32.xlu1 %v1019_v2, %s950_s22  ;;  %471 = vst [vmem:[#allocation3 + $0x68] sm:$0xf] %v1019_v2  ;;  %256 = vrot.lane.b32.xlu0 %v1019_v2, %s951_s23  ;;  %v1028_v4 = vcombine.high %v1021_v3, %v1021_v3  ;;  %v382_v5 = vcombine.low %v1021_v3, %v1021_v3 }
  0x1b   : > { %v383_v6 = vcombine.low %v1019_v2, %v1019_v2  ;;  %v1069_v7 = vcombine.high %v1019_v2, %v1019_v2 }
  0x1c   : > { %470 = vst [vmem:[#allocation3 + $0x60] sm:$0xf] %v1028_v4 }
  0x1e   : > { %298 = vrot.lane.b32.xlu1 %v1021_v3, %s950_s22  ;;  %252 = vrot.lane.b32.xlu0 %v1021_v3, %s951_s23 }
  0x22   : > { %229 = vrot.lane.b32.xlu1 %v1019_v2, %s952_s24  ;;  %225 = vrot.lane.b32.xlu0 %v1021_v3, %s952_s24 }
  0x26   : > { %300 = vrot.lane.b32.xlu1 %v1028_v4, %s950_s22  ;;  %254 = vrot.lane.b32.xlu0 %v1028_v4, %s951_s23 }
  0x2a   : > { %275 = vrot.lane.b32.xlu1 %v1028_v4, %s953_s25  ;;  %227 = vrot.lane.b32.xlu0 %v1028_v4, %s952_s24 }
  0x2e   : > { %273 = vrot.lane.b32.xlu1 %v1021_v3, %s953_s25  ;;  %277 = vrot.lane.b32.xlu0 %v1019_v2, %s953_s25 }
  0x32   : > { %350 = vrot.lane.b32.xlu1 %v1019_v2, %s954_s26  ;;  %348 = vrot.lane.b32.xlu0 %v1028_v4, %s954_s26 }
  0x36   : > { %333 = vrot.lane.b32.xlu1 %v1028_v4, %s955_s27  ;;  %346 = vrot.lane.b32.xlu0 %v1021_v3, %s954_s26  ;;  %s794_s26 = sld [smem:[#allocation4]] }
  0x3a   : > { %369 = vrot.lane.b32.xlu1 %v1028_v4, %s956_s28  ;;  %335 = vrot.lane.b32.xlu0 %v1019_v2, %s955_s27 }
  0x3e   : > { %331 = vrot.lane.b32.xlu1 %v1021_v3, %s955_s27  ;;  %371 = vrot.lane.b32.xlu0 %v1019_v2, %s956_s28 }
  0x42   : > { %386 = vrot.lane.b32.xlu1 %v1021_v3, %s957_s29  ;;  %367 = vrot.lane.b32.xlu0 %v1021_v3, %s956_s28 }
  0x46   : > { %384 = vrot.lane.b32.xlu1 %v382_v5, %s957_s29  ;;  %388 = vrot.lane.b32.xlu0 %v383_v6, %s957_s29  ;;  %s198_s29 = scalar_lea.vmem %s1262_s4, %s876_s3 }
  0x4a   : > { %416 = vrot.lane.b32.xlu1 %v1019_v2, %s958_s30  ;;  %414 = vrot.lane.b32.xlu0 %v1028_v4, %s958_s30 }
  0x4e   : > { %452 = vrot.lane.b32.xlu1 %v1019_v2, %s959_s5  ;;  %450 = vrot.lane.b32.xlu0 %v1028_v4, %s959_s5 }
  0x52   : > { %448 = vrot.lane.b32.xlu1 %v1021_v3, %s959_s5  ;;  %412 = vrot.lane.b32.xlu0 %v1021_v3, %s958_s30 }
  0x56   : > { %401 = vrot.lane.b32.xlu1 %v1019_v2, %s960_s6  ;;  %399 = vrot.lane.b32.xlu0 %v1028_v4, %s960_s6 }
  0x5a   : > { %437 = vrot.lane.b32.xlu1 %v1019_v2, %s961_s7  ;;  %435 = vrot.lane.b32.xlu0 %v1028_v4, %s961_s7 }
  0x5e   : > { %433 = vrot.lane.b32.xlu1 %v1021_v3, %s961_s7  ;;  %397 = vrot.lane.b32.xlu0 %v1021_v3, %s960_s6 }
  0x62   : > { %477 = vrot.lane.b32.xlu1 %v1069_v7, %s962_s8  ;;  %475 = vrot.lane.b32.xlu0 %v1019_v2, %s962_s8 }
  0x66   : > { %513 = vrot.lane.b32.xlu1 %v1069_v7, %s963_s9  ;;  %511 = vrot.lane.b32.xlu0 %v1019_v2, %s963_s9 }
  0x6a   : > { %509 = vrot.lane.b32.xlu1 %v1028_v4, %s963_s9  ;;  %473 = vrot.lane.b32.xlu0 %v1028_v4, %s962_s8 }
  0x6e   : > { %498 = vrot.lane.b32.xlu1 %v1069_v7, %s964_s10  ;;  %496 = vrot.lane.b32.xlu0 %v1019_v2, %s964_s10 }
  0x72   : > { %575 = vrot.lane.b32.xlu1 %v1019_v2, %s965_s11  ;;  %494 = vrot.lane.b32.xlu0 %v1028_v4, %s964_s10 }
  0x76   : > { %573 = vrot.lane.b32.xlu1 %v1028_v4, %s965_s11  ;;  %577 = vrot.lane.b32.xlu0 %v1069_v7, %s965_s11 }
  0x7a   : > { %534 = vrot.lane.b32.xlu1 %v1069_v7, %s966_s12  ;;  %532 = vrot.lane.b32.xlu0 %v1019_v2, %s966_s12 }
  0x7e   : > { %562 = vrot.lane.b32.xlu1 %v1069_v7, %s967_s13  ;;  %560 = vrot.lane.b32.xlu0 %v1019_v2, %s967_s13 }
  0x82   : > { %547 = vrot.lane.b32.xlu1 %v383_v6, %s968_s14  ;;  %530 = vrot.lane.b32.xlu0 %v1028_v4, %s966_s12 }
  0x86   : > { %558 = vrot.lane.b32.xlu1 %v1028_v4, %s967_s13  ;;  %549 = vrot.lane.b32.xlu0 %v1019_v2, %s968_s14 }
  0x8a   : > { %611 = vrot.lane.b32.xlu1 %v1019_v2, %s969_s15  ;;  %545 = vrot.lane.b32.xlu0 %v1021_v3, %s968_s14 }
  0x8c   : > { %v303_v11 = vpop.permute.xlu1 %302  ;;  %v257_v12 = vpop.permute.xlu0 %256 }
  0x8e   : > { %645 = vrot.lane.b32.xlu1 %v1019_v2, %s970_s16  ;;  %613 = vrot.lane.b32.xlu0 %v1069_v7, %s969_s15 }
  0x90   : > { %v299_v15 = vpop.permute.xlu1 %298  ;;  %v253_v16 = vpop.permute.xlu0 %252 }
  0x92   : > { %609 = vrot.lane.b32.xlu1 %v1028_v4, %s969_s15  ;;  %647 = vrot.lane.b32.xlu0 %v1069_v7, %s970_s16 }
  0x94   : > { %v230_v21 = vpop.permute.xlu1 %229  ;;  %v226_v22 = vpop.permute.xlu0 %225 }
  0x96   : > { %596 = vrot.lane.b32.xlu1 %v1019_v2, %s971_s19  ;;  %643 = vrot.lane.b32.xlu0 %v1028_v4, %s970_s16 }
  0x98   : > { %v301_v25 = vpop.permute.xlu1 %300  ;;  %v255_v26 = vpop.permute.xlu0 %254 }
  0x99   : > { %v305_v27 = vsel %vm304_vm0, %v299_v15, %v301_v25  ;;  %v306_v28 = vsel %vm304_vm0, %v301_v25, %v303_v11  ;;  %v259_v29 = vsel %vm258_vm1, %v253_v16, %v255_v26  ;;  %v260_v30 = vsel %vm258_vm1, %v255_v26, %v257_v12 }
  0x9a   : > { %v309_v31 = vsel %vm290_vm2, %v305_v27, 0.0  ;;  %v310_v32 = vsel %vm291_vm3, %v306_v28, 0.0  ;;  %v263_v33 = vsel %vm242_vm4, %v259_v29, 0.0  ;;  %v264_v34 = vsel %vm243_vm5, %v260_v30, 0.0  ;;  %594 = vrot.lane.b32.xlu1 %v1028_v4, %s971_s19  ;;  %598 = vrot.lane.b32.xlu0 %v1069_v7, %s971_s19 }
  0x9b   : > { %v313_v35 = vrot.slane %v309_v31, 4  ;;  %v314_v36 = vrot.slane %v310_v32, 4  ;;  %v267_v37 = vrot.slane %v263_v33, 4  ;;  %v268_v38 = vrot.slane %v264_v34, 4 }
  0x9c   : > { %v276_v39 = vpop.permute.xlu1 %275  ;;  %v228_v40 = vpop.permute.xlu0 %227  ;;  %vm418_vm0 = vcmask 113664   ;;  %vm454_vm1 = vcmask 7168  }
  0x9d   : > { %317 = vst [vmem:[#allocation3 + $0x10] sm:$0xf0] %v313_v35  ;;  %318 = vst [vmem:[#allocation3 + $0x18] sm:$0xf0] %v314_v36  ;;  %v232_v41 = vsel %vm231_vm8, %v226_v22, %v228_v40  ;;  %v233_v42 = vsel %vm231_vm8, %v228_v40, %v230_v21  ;;  %vm403_vm8 = vcmask 121856  }
  0x9e   : > { %271 = vst [vmem:[#allocation3] sm:$0xf0] %v267_v37  ;;  %272 = vst [vmem:[#allocation3 + $0x8] sm:$0xf0] %v268_v38  ;;  %v236_v43 = vsel %vm212_vm6, %v232_v41, 0.0  ;;  %v237_v44 = vsel %vm213_vm7, %v233_v42, 0.0  ;;  %634 = vrot.lane.b32.xlu1 %v1069_v7, %s972_s20  ;;  %632 = vrot.lane.b32.xlu0 %v1019_v2, %s972_s20 }
  0x9f   : > { %238 = vst [vmem:[#allocation3] sm:$0xf] %v236_v43  ;;  %239 = vst [vmem:[#allocation3 + $0x8] sm:$0xf] %v237_v44 }
  0xa0   : > { %v274_v45 = vpop.permute.xlu1 %273  ;;  %v278_v46 = vpop.permute.xlu0 %277 }
  0xa1   : > { %v280_v47 = vsel %vm279_vm9, %v274_v45, %v276_v39  ;;  %v281_v48 = vsel %vm279_vm9, %v276_v39, %v278_v46  ;;  %vm439_vm9 = vcmask 15360  }
  0xa2   : > { %284 = vst [vmem:[#allocation3 + $0x10] sm:$0xf] %v280_v47  ;;  %285 = vst [vmem:[#allocation3 + $0x18] sm:$0xf] %v281_v48  ;;  %666 = vrot.lane.b32.xlu1 %v1019_v2, %s973_s21  ;;  %630 = vrot.lane.b32.xlu0 %v1028_v4, %s972_s20 }
  0xa4   : > { %v351_v49 = vpop.permute.xlu1 %350  ;;  %v349_v50 = vpop.permute.xlu0 %348 }
  0xa5   : > { %v354_v51 = vsel %vm352_vm10, %v349_v50, %v351_v49 }
  0xa6   : > { %v358_v52 = vsel %vm213_vm7, %v354_v51, 0.0  ;;  %664 = vrot.lane.b32.xlu1 %v1028_v4, %s973_s21  ;;  %668 = vrot.lane.b32.xlu0 %v1069_v7, %s973_s21  ;;  %v681_v59 = vld [vmem:[#allocation3 + $0x8] sm:$0xff]  ;;  %v680_v62 = vld [vmem:[#allocation3] sm:$0xff]  ;;  %v1162_v4 = vadd.s32 2, %v1094_v13 }
  0xa7   : > { %v362_v53 = vrot.slane %v358_v52, 4 }
  0xa8   : > { %v334_v57 = vpop.permute.xlu1 %333  ;;  %v347_v58 = vpop.permute.xlu0 %346  ;;  %vm323_vm14 = vcmp.lt.s32.totalorder %v1162_v4, 16 }
  0xa9   : > { %366 = vst [vmem:[#allocation3 + $0x28] sm:$0xf0] %v362_v53  ;;  %v353_v60 = vsel %vm352_vm10, %v347_v58, %v349_v50  ;;  %v683_v61 = vld [vmem:[#allocation3 + $0x18] sm:$0xff]  ;;  %v682_v63 = vld [vmem:[#allocation3 + $0x10] sm:$0xff]  ;;  %vm479_vm10 = vcmask 1039360  }
  0xaa   : > { %v357_v0 = vsel %vm212_vm6, %v353_v60, 0.0  ;;  %v878_v1 = vpack.c.bf16 %v683_v61, %v681_v59  ;;  %v880_v2 = vpack.c.bf16 %v682_v63, %v680_v62  ;;  %709 = vperm.xlu0 %936, %v706_v56  }
  0xab   : > { %v361_v3 = vrot.slane %v357_v0, 4 }
  0xac   : > { %v370_v5 = vpop.permute.xlu1 %369  ;;  %879 = vmatprep.subr.bf16.mxu0 %v878_v1  ;;  %v336_v6 = vpop.permute.xlu0 %335 }
  0xad   : > { %365 = vst [vmem:[#allocation3 + $0x20] sm:$0xf0] %v361_v3  ;;  %v339_v7 = vsel %vm337_vm11, %v334_v57, %v336_v6  ;;  %881 = vmatpush1.bf16.msra.mxu0 %v880_v2 }
  0xae   : > { %v343_v8 = vsel %vm324_vm12, %v339_v7, 0.0 }
  0xaf   : > { %345 = vst [vmem:[#allocation3 + $0x28] sm:$0xf] %v343_v8 }
  0xb0   : > { %v332_v9 = vpop.permute.xlu1 %331  ;;  %v372_v10 = vpop.permute.xlu0 %371 }
  0xb1   : > { %v338_v11 = vsel %vm337_vm11, %v332_v9, %v334_v57  ;;  %v375_v12 = vsel %vm373_vm13, %v370_v5, %v372_v10  ;;  %vm515_vm11 = vcmask 932864  }
  0xb2   : > { %v342_v13 = vsel %vm323_vm14, %v338_v11, 0.0  ;;  %v379_v14 = vsel %vm243_vm5, %v375_v12, 0.0 }
  0xb3   : > { %344 = vst [vmem:[#allocation3 + $0x20] sm:$0xf] %v342_v13  ;;  %381 = vst [vmem:[#allocation3 + $0x38] sm:$0xf] %v379_v14 }
  0xb4   : > { %v387_v15 = vpop.permute.xlu1 %386  ;;  %v368_v16 = vpop.permute.xlu0 %367 }
  0xb5   : > { %v374_v21 = vsel %vm373_vm13, %v368_v16, %v370_v5  ;;  %vm500_vm13 = vcmask 1031168  }
  0xb6   : > { %v378_v22 = vsel %vm242_vm4, %v374_v21, 0.0  ;;  %v685_v36 = vld [vmem:[#allocation3 + $0x28] sm:$0xff] }
  0xb7   : > { %380 = vst [vmem:[#allocation3 + $0x30] sm:$0xf] %v378_v22 }
  0xb8   : > { %v385_v25 = vpop.permute.xlu1 %384  ;;  %v389_v26 = vpop.permute.xlu0 %388 }
  0xb9   : > { %v391_v27 = vsel %vm390_vm15, %v385_v25, %v387_v15  ;;  %v392_v28 = vsel %vm390_vm15, %v387_v15, %v389_v26  ;;  %vm579_vm15 = vcmask 900096  }
  0xba   : > { %395 = vst [vmem:[#allocation3 + $0x30] sm:$0xf0] %v391_v27  ;;  %396 = vst [vmem:[#allocation3 + $0x38] sm:$0xf0] %v392_v28  ;;  %v684_v39 = vld [vmem:[#allocation3 + $0x20] sm:$0xff] }
  0xbc   : > { %v417_v29 = vpop.permute.xlu1 %416  ;;  %v415_v30 = vpop.permute.xlu0 %414 }
  0xbd   : > { %v420_v31 = vsel %vm418_vm0, %v415_v30, %v417_v29 }
  0xbe   : > { %v424_v32 = vsel %vm324_vm12, %v420_v31, 0.0 }
  0xbf   : > { %v428_v33 = vrot.slane %v424_v32, 4 }
  0xc0   : > { %v453_v34 = vpop.permute.xlu1 %452  ;;  %v451_v35 = vpop.permute.xlu0 %450 }
  0xc1   : > { %432 = vst [vmem:[#allocation3 + $0x48] sm:$0xf0] %v428_v33  ;;  %v456_v37 = vsel %vm454_vm1, %v451_v35, %v453_v34  ;;  %v687_v38 = vld [vmem:[#allocation3 + $0x38] sm:$0xff]  ;;  %v686_v40 = vld [vmem:[#allocation3 + $0x30] sm:$0xff] }
  0xc2   : > { %v460_v41 = vsel %vm243_vm5, %v456_v37, 0.0  ;;  %v882_v42 = vpack.c.bf16 %v687_v38, %v685_v36  ;;  %v884_v43 = vpack.c.bf16 %v686_v40, %v684_v39 }
  0xc3   : > { %v464_v44 = vrot.slane %v460_v41, 4 }
  0xc4   : > { %v449_v45 = vpop.permute.xlu1 %448  ;;  %883 = vmatprep.subr.bf16.mxu0 %v882_v42  ;;  %v413_v46 = vpop.permute.xlu0 %412 }
  0xc5   : > { %468 = vst [vmem:[#allocation3 + $0x58] sm:$0xf0] %v464_v44  ;;  %v455_v47 = vsel %vm454_vm1, %v449_v45, %v451_v35  ;;  %v419_v48 = vsel %vm418_vm0, %v413_v46, %v415_v30  ;;  %885 = vmatpush1.bf16.msra.mxu0 %v884_v43  ;;  %vm536_vm0 = vcmask 924672   ;;  %vm564_vm1 = vcmask 908288  }
  0xc6   : > { %v459_v49 = vsel %vm242_vm4, %v455_v47, 0.0  ;;  %v423_v50 = vsel %vm323_vm14, %v419_v48, 0.0 }
  0xc7   : > { %v463_v51 = vrot.slane %v459_v49, 4  ;;  %v427_v52 = vrot.slane %v423_v50, 4 }
  0xc8   : > { %v402_v53 = vpop.permute.xlu1 %401  ;;  %v400_v55 = vpop.permute.xlu0 %399 }
  0xc9   : > { %467 = vst [vmem:[#allocation3 + $0x50] sm:$0xf0] %v463_v51  ;;  %431 = vst [vmem:[#allocation3 + $0x40] sm:$0xf0] %v427_v52  ;;  %v405_v56 = vsel %vm403_vm8, %v400_v55, %v402_v53 }
  0xca   : > { %v409_v57 = vsel %vm291_vm3, %v405_v56, 0.0 }
  0xcb   : > { %411 = vst [vmem:[#allocation3 + $0x48] sm:$0xf] %v409_v57 }
  0xcc   : > { %v438_v58 = vpop.permute.xlu1 %437  ;;  %v436_v59 = vpop.permute.xlu0 %435 }
  0xcd   : > { %v441_v60 = vsel %vm439_vm9, %v436_v59, %v438_v58 }
  0xce   : > { %v445_v61 = vsel %vm213_vm7, %v441_v60, 0.0 }
  0xcf   : > { %447 = vst [vmem:[#allocation3 + $0x58] sm:$0xf] %v445_v61 }
  0xd0   : > { %v434_v62 = vpop.permute.xlu1 %433  ;;  %v398_v63 = vpop.permute.xlu0 %397 }
  0xd1   : > { %v440_v0 = vsel %vm439_vm9, %v434_v62, %v436_v59  ;;  %v404_v1 = vsel %vm403_vm8, %v398_v63, %v400_v55  ;;  %vm551_vm8 = vcmask 916480   ;;  %vm615_vm9 = vcmask 793600  }
  0xd2   : > { %v444_v2 = vsel %vm212_vm6, %v440_v0, 0.0  ;;  %v408_v3 = vsel %vm290_vm2, %v404_v1, 0.0  ;;  %v689_v9 = vld [vmem:[#allocation3 + $0x48] sm:$0xff] }
  0xd3   : > { %446 = vst [vmem:[#allocation3 + $0x50] sm:$0xf] %v444_v2  ;;  %410 = vst [vmem:[#allocation3 + $0x40] sm:$0xf] %v408_v3 }
  0xd4   : > { %v478_v5 = vpop.permute.xlu1 %477  ;;  %v476_v6 = vpop.permute.xlu0 %475 }
  0xd5   : > { %v481_v7 = vsel %vm479_vm10, %v476_v6, %v478_v5 }
  0xd6   : > { %v485_v8 = vsel %vm291_vm3, %v481_v7, 0.0  ;;  %v691_v10 = vld [vmem:[#allocation3 + $0x58] sm:$0xff] }
  0xd7   : > { %v489_v11 = vrot.slane %v485_v8, 4  ;;  %v886_v12 = vpack.c.bf16 %v691_v10, %v689_v9 }
  0xd8   : > { %v514_v13 = vpop.permute.xlu1 %513  ;;  %v512_v14 = vpop.permute.xlu0 %511 }
  0xd9   : > { %493 = vst [vmem:[#allocation3 + $0x68] sm:$0xf0] %v489_v11  ;;  %v517_v15 = vsel %vm515_vm11, %v512_v14, %v514_v13  ;;  %887 = vmatprep.subr.bf16.mxu0 %v886_v12 }
  0xda   : > { %v521_v16 = vsel %vm213_vm7, %v517_v15, 0.0  ;;  %v688_v21 = vld [vmem:[#allocation3 + $0x40] sm:$0xff]  ;;  %v690_v22 = vld [vmem:[#allocation3 + $0x50] sm:$0xff] }
  0xdb   : > { %v525_v25 = vrot.slane %v521_v16, 4  ;;  %v888_v26 = vpack.c.bf16 %v690_v22, %v688_v21 }
  0xdc   : > { %v510_v27 = vpop.permute.xlu1 %509  ;;  %v474_v28 = vpop.permute.xlu0 %473 }
  0xdd   : > { %529 = vst [vmem:[#allocation3 + $0x78] sm:$0xf0] %v525_v25  ;;  %v516_v29 = vsel %vm515_vm11, %v510_v27, %v512_v14  ;;  %v480_v30 = vsel %vm479_vm10, %v474_v28, %v476_v6  ;;  %889 = vmatpush1.bf16.msra.mxu0 %v888_v26  ;;  %vm649_vm10 = vcmask 777216  }
  0xde   : > { %v520_v31 = vsel %vm212_vm6, %v516_v29, 0.0  ;;  %v484_v32 = vsel %vm290_vm2, %v480_v30, 0.0 }
  0xdf   : > { %v524_v33 = vrot.slane %v520_v31, 4  ;;  %v488_v34 = vrot.slane %v484_v32, 4 }
  0xe0   : > { %v499_v35 = vpop.permute.xlu1 %498  ;;  %v497_v36 = vpop.permute.xlu0 %496  ;;  %v693_v49 = vld [vmem:[#allocation3 + $0x68] sm:$0xff] }
  0xe1   : > { %528 = vst [vmem:[#allocation3 + $0x70] sm:$0xf0] %v524_v33  ;;  %492 = vst [vmem:[#allocation3 + $0x60] sm:$0xf0] %v488_v34  ;;  %v502_v37 = vsel %vm500_vm13, %v497_v36, %v499_v35 }
  0xe2   : > { %v506_v38 = vsel %vm324_vm12, %v502_v37, 0.0 }
  0xe3   : > { %508 = vst [vmem:[#allocation3 + $0x78] sm:$0xf] %v506_v38 }
  0xe4   : > { %v576_v39 = vpop.permute.xlu1 %575  ;;  %v495_v40 = vpop.permute.xlu0 %494 }
  0xe5   : > { %v501_v41 = vsel %vm500_vm13, %v495_v40, %v497_v36 }
  0xe6   : > { %v505_v42 = vsel %vm323_vm14, %v501_v41, 0.0 }
  0xe7   : > { %507 = vst [vmem:[#allocation3 + $0x70] sm:$0xf] %v505_v42 }
  0xe8   : > { %v574_v43 = vpop.permute.xlu1 %573  ;;  %v578_v44 = vpop.permute.xlu0 %577  ;;  %v692_v59 = vld [vmem:[#allocation3 + $0x60] sm:$0xff] }
  0xe9   : > { %v580_v45 = vsel %vm579_vm15, %v574_v43, %v576_v39  ;;  %v581_v46 = vsel %vm579_vm15, %v576_v39, %v578_v44 }
  0xea   : > { %v584_v47 = vsel %vm323_vm14, %v580_v45, 0.0  ;;  %v585_v48 = vsel %vm324_vm12, %v581_v46, 0.0  ;;  %v695_v50 = vld [vmem:[#allocation3 + $0x78] sm:$0xff] }
  0xeb   : > { %v588_v51 = vrot.slane %v584_v47, 4  ;;  %v589_v52 = vrot.slane %v585_v48, 4  ;;  %v890_v53 = vpack.c.bf16 %v695_v50, %v693_v49 }
  0xec   : > { %v535_v55 = vpop.permute.xlu1 %534  ;;  %v533_v56 = vpop.permute.xlu0 %532 }
  0xed   : > { %592 = vst [vmem:[#allocation3 + $0x90] sm:$0xf0] %v588_v51  ;;  %593 = vst [vmem:[#allocation3 + $0x98] sm:$0xf0] %v589_v52  ;;  %v538_v57 = vsel %vm536_vm0, %v533_v56, %v535_v55  ;;  %891 = vmatprep.subr.bf16.mxu0 %v890_v53 }
  0xee   : > { %v542_v58 = vsel %vm243_vm5, %v538_v57, 0.0  ;;  %v694_v60 = vld [vmem:[#allocation3 + $0x70] sm:$0xff] }
  0xef   : > { %544 = vst [vmem:[#allocation3 + $0x88] sm:$0xf] %v542_v58  ;;  %v892_v61 = vpack.c.bf16 %v694_v60, %v692_v59 }
  0xf0   : > { %v563_v62 = vpop.permute.xlu1 %562  ;;  %v561_v63 = vpop.permute.xlu0 %560 }
  0xf1   : > { %v566_v0 = vsel %vm564_vm1, %v561_v63, %v563_v62  ;;  %893 = vmatpush1.bf16.msra.mxu0 %v892_v61 }
  0xf2   : > { %v570_v1 = vsel %vm291_vm3, %v566_v0, 0.0  ;;  %v679_v0 = vld [vmem:[%s1259_s1] sm:$0xf] }
  0xf3   : > { %572 = vst [vmem:[#allocation3 + $0x98] sm:$0xf] %v570_v1 }
  0xf4   : > { %v548_v2 = vpop.permute.xlu1 %547  ;;  %v531_v3 = vpop.permute.xlu0 %530 }
  0xf5   : > { %v537_v5 = vsel %vm536_vm0, %v531_v3, %v533_v56  ;;  %v797_v3 = vstv %s794_s26 }
  0xf6   : > { %v541_v6 = vsel %vm242_vm4, %v537_v5, 0.0 }
  0xf7   : > { %543 = vst [vmem:[#allocation3 + $0x80] sm:$0xf] %v541_v6 }
  0xf8   : > { %v559_v7 = vpop.permute.xlu1 %558  ;;  %v550_v8 = vpop.permute.xlu0 %549 }
  0xf9   : > { %v565_v9 = vsel %vm564_vm1, %v559_v7, %v561_v63  ;;  %v553_v10 = vsel %vm551_vm8, %v548_v2, %v550_v8 }
  0xfa   : > { %v569_v11 = vsel %vm290_vm2, %v565_v9, 0.0  ;;  %557 = vst [vmem:[#allocation3 + $0x88] sm:$0xf0] %v553_v10  ;;  %v699_v25 = vld [vmem:[#allocation3 + $0x98] sm:$0xff] }
  0xfb   : > { %571 = vst [vmem:[#allocation3 + $0x90] sm:$0xf] %v569_v11 }
  0xfc   : > { %v612_v12 = vpop.permute.xlu1 %611  ;;  %v546_v13 = vpop.permute.xlu0 %545 }
  0xfd   : > { %v552_v14 = vsel %vm551_vm8, %v546_v13, %v548_v2 }
  0xfe   : > { %556 = vst [vmem:[#allocation3 + $0x80] sm:$0xf0] %v552_v14 }
 0x100   : > { %v646_v15 = vpop.permute.xlu1 %645  ;;  %v614_v16 = vpop.permute.xlu0 %613 }
 0x101   : > { %v617_v21 = vsel %vm615_vm9, %v612_v12, %v614_v16  ;;  %v697_v22 = vld [vmem:[#allocation3 + $0x88] sm:$0xff] }
 0x102   : > { %v621_v26 = vsel %vm243_vm5, %v617_v21, 0.0  ;;  %v894_v27 = vpack.c.bf16 %v699_v25, %v697_v22  ;;  %v698_v34 = vld [vmem:[#allocation3 + $0x90] sm:$0xff]  ;;  %vm600_vm5 = vcmask 801792  }
 0x103   : > { %v625_v28 = vrot.slane %v621_v26, 4 }
 0x104   : > { %v610_v29 = vpop.permute.xlu1 %609  ;;  %v648_v30 = vpop.permute.xlu0 %647  ;;  %895 = vmatprep.subr.bf16.mxu0 %v894_v27 }
 0x105   : > { %629 = vst [vmem:[#allocation3 + $0xa8] sm:$0xf0] %v625_v28  ;;  %v616_v31 = vsel %vm615_vm9, %v610_v29, %v612_v12  ;;  %v651_v32 = vsel %vm649_vm10, %v646_v15, %v648_v30  ;;  %v696_v33 = vld [vmem:[#allocation3 + $0x80] sm:$0xff] }
 0x106   : > { %v620_v35 = vsel %vm242_vm4, %v616_v31, 0.0  ;;  %v655_v36 = vsel %vm291_vm3, %v651_v32, 0.0  ;;  %v896_v20 = vpack.c.bf16 %v698_v34, %v696_v33  ;;  %vm636_vm3 = vcmask 785408  }
 0x107   : > { %v624_v37 = vrot.slane %v620_v35, 4  ;;  %v659_v38 = vrot.slane %v655_v36, 4  ;;  %vm716_vm4 = vcmask 1043456  }
 0x108   : > { %v597_v39 = vpop.permute.xlu1 %596  ;;  %v644_v40 = vpop.permute.xlu0 %643  ;;  %897 = vmatpush1.bf16.msra.mxu0 %v896_v20 }
 0x109   : > { %628 = vst [vmem:[#allocation3 + $0xa0] sm:$0xf0] %v624_v37  ;;  %663 = vst [vmem:[#allocation3 + $0xb8] sm:$0xf0] %v659_v38  ;;  %v650_v41 = vsel %vm649_vm10, %v644_v40, %v646_v15 }
 0x10a   : > { %v654_v42 = vsel %vm290_vm2, %v650_v41, 0.0  ;;  %vm670_vm2 = vcmask 769024  }
 0x10b   : > { %v658_v43 = vrot.slane %v654_v42, 4 }
 0x10c   : > { %v595_v19 = vpop.permute.xlu1 %594  ;;  %v599_v44 = vpop.permute.xlu0 %598 }
 0x10d   : > { %662 = vst [vmem:[#allocation3 + $0xb0] sm:$0xf0] %v658_v43  ;;  %v601_v18 = vsel %vm600_vm5, %v595_v19, %v597_v39  ;;  %v602_v45 = vsel %vm600_vm5, %v597_v39, %v599_v44 }
 0x10e   : > { %v605_v46 = vsel %vm212_vm6, %v601_v18, 0.0  ;;  %v606_v47 = vsel %vm213_vm7, %v602_v45, 0.0  ;;  %vm712_vm6 = vcmask 818176  }
 0x10f   : > { %607 = vst [vmem:[#allocation3 + $0xa0] sm:$0xf] %v605_v46  ;;  %608 = vst [vmem:[#allocation3 + $0xa8] sm:$0xf] %v606_v47 }
 0x110   : > { %v635_v48 = vpop.permute.xlu1 %634  ;;  %v633_v49 = vpop.permute.xlu0 %632 }
 0x111   : > { %v638_v17 = vsel %vm636_vm3, %v633_v49, %v635_v48 }
 0x112   : > { %642 = vst [vmem:[#allocation3 + $0xb8] sm:$0xf] %v638_v17 }
 0x114   : > { %v667_v50 = vpop.permute.xlu1 %666  ;;  %v631_v51 = vpop.permute.xlu0 %630 }
 0x115   : > { %v637_v52 = vsel %vm636_vm3, %v631_v51, %v633_v49 }
 0x116   : > { %641 = vst [vmem:[#allocation3 + $0xb0] sm:$0xf] %v637_v52  ;;  %v701_v57 = vld [vmem:[#allocation3 + $0xa8] sm:$0xff]  ;;  %v700_v61 = vld [vmem:[#allocation3 + $0xa0] sm:$0xff] }
 0x118   : > { %v665_v53 = vpop.permute.xlu1 %664  ;;  %v669_v55 = vpop.permute.xlu0 %668 }
 0x119   : > { %v671_v56 = vsel %vm670_vm2, %v665_v53, %v667_v50  ;;  %v672_v23 = vsel %vm670_vm2, %v667_v50, %v669_v55  ;;  %v703_v58 = vld [vmem:[#allocation3 + $0xb8] sm:$0xff] }
 0x11a   : > { %v675_v24 = vsel %vm323_vm14, %v671_v56, 0.0  ;;  %v676_v59 = vsel %vm324_vm12, %v672_v23, 0.0  ;;  %v898_v60 = vpack.c.bf16 %v703_v58, %v701_v57 }
 0x11b   : > { %677 = vst [vmem:[#allocation3 + $0xc0] sm:$0xf] %v675_v24  ;;  %678 = vst [vmem:[#allocation3 + $0xc8] sm:$0xf] %v676_v59 }
 0x11c   : > { %899 = vmatprep.subr.bf16.mxu0 %v898_v60 }
 0x11d   : > { %v702_v62 = vld [vmem:[#allocation3 + $0xb0] sm:$0xff] }
 0x11e   : > { %v900_v63 = vpack.c.bf16 %v702_v62, %v700_v61 }
 0x120   : > { %901 = vmatpush1.bf16.msra.mxu0 %v900_v63 }
 0x122   : > { %v705_v1 = vld [vmem:[#allocation3 + $0xc8] sm:$0xf]  ;;  %v704_v2 = vld [vmem:[#allocation3 + $0xc0] sm:$0xf] }
 0x123   : > { %871 = vmatprep.subr.msk.mxu0 %vm716_vm4, %v705_v1 }
 0x124   : > { %872 = vmatpush1.msk.msra.mxu0 %vm716_vm4, %v704_v2 }
 0x125   : > { %873 = vmatmul.mubr.msk.f32.vlgmr.msra.gmra.mrb[0].mxu0 %vm712_vm6, %v679_v0 }
 0x129   : > { %v710_v54 = vpop.permute.xlu0 %709 }
 0x1f8   : > { %v789_v4 = vpop.f32.mrb[0].mxu0 }
 0x1f9   : > { %v790_v5 = vadd.f32 %v789_v4, %v710_v54  ;;  %v791_v6 = vpop.f32.mrb[1].mxu0 }
 0x1fa   : > { %v792_v7 = vadd.f32 %v791_v6, %v710_v54 }
 0x1fb   : > { %vm795_vm7 = vcmp.ge.f32.partialorder %v790_v5, 0.0  ;;  %v798_v8 = vmul.f32 %v797_v3, %v790_v5 }
 0x1fc   : > { %vm796_vm12 = vcmp.ge.f32.partialorder %v792_v7, 0.0  ;;  %v799_v9 = vmul.f32 %v797_v3, %v792_v7 }
 0x1fd   : > { %v800_v10 = vsel %vm795_vm7, %v790_v5, %v798_v8 }
 0x1fe   : > { %v801_v11 = vsel %vm796_vm12, %v792_v7, %v799_v9 }
 0x1ff   : > { %v804_v12 = vcombine.low %v800_v10, %v801_v11 }
 0x201   : > { %806 = vst [vmem:[%s198_s29] sm:$0xff] %v804_v12 }
 0x202 PF: > { %s15_s17 = sadd.s32 1, %s947_s17  }
 0x203   : > { %p12_p4 = scmp.ge.s32.totalorder %s15_s17, 4  }
 0x205   :  { %14 = sbr.rel (!%p12_p4) target bundleno = 2 (0x2), region = 66 }

</bundles_post_ra>
